<compile_context>
chip_gen: v5e
topology: v5e:2x2
jax: 0.10.0
libtpu: 0.0.40
codegen_flags: <defaults>
</compile_context>

<pallas_src>
import jax
import jax.numpy as jnp
from jax.experimental import pallas as pl
from jax.experimental.pallas import tpu as pltpu

PRED_COLS = ['reactivity', 'deg_Mg_pH10', 'deg_Mg_50C', 'deg_pH10', 'deg_50C']
NUM_COLS = len(PRED_COLS)
LEN_SCORED = 68
_LANES = 128  # padded column dimension so selector / outputs are lane dense


def _colwise_loss_kernel(yhat_ref, y_ref, w_ref, sel_ref, out_ref):
    """grid = (n_splits, n_batch_tiles); the inner axis is the batch reduction.

    yhat_ref, y_ref : (TB, L*C)    lane-dense flattened [seq, col] layout, native dtype
    w_ref           : (TB, 1)      f32 per-sample weights (0 for padded rows)
    sel_ref         : (L*C, 128)   f32 one-hot selector; folds the [:, :68, :] mask
                                   and the per-column grouping into one matmul
    out_ref         : (1, 1, 128)  f32 per-(split, column) weighted-SSE accumulator
    """
    t = pl.program_id(1)

    @pl.when(t == 0)
    def _init():
        out_ref[...] = jnp.zeros_like(out_ref)

    # Subtract in the native dtype (bf16 VPU on v6e/v7x); square/accumulate in f32.
    diff = (yhat_ref[...] - y_ref[...]).astype(jnp.float32)            # (TB, LC)
    d2 = diff * diff                                                   # (TB, LC)

    # Masked per-column grouping on the (otherwise idle) MXU:
    #   (TB, LC) @ (LC, 128) -> (TB, 128); lanes >= NUM_COLS stay exactly zero.
    sse_bc = jnp.dot(d2, sel_ref[...],
                     preferred_element_type=jnp.float32,
                     precision=jax.lax.Precision.HIGHEST)

    # Sample weights applied *after* the per-sample reduction.
    out_ref[...] += jnp.sum(sse_bc * w_ref[...], axis=0, keepdims=True)[None]


def colwise_loss(yhat, y, column_weight=None, sample_weight=None,
                 *, batch_tile=256, num_splits=2):
    """score = sum_i cw_i * sqrt(sum_b w_b * mean_{t<68} diff^2 / sum_b w_b) / 5."""
    B, L, C = yhat.shape
    assert C == NUM_COLS and L >= LEN_SCORED
    LC = L * C

    cw = (jnp.ones((C,), jnp.float32) if column_weight is None
          else jnp.asarray(column_weight, jnp.float32))
    sw = (jnp.ones((B,), jnp.float32) if sample_weight is None
          else jnp.asarray(sample_weight, jnp.float32))

    # Free row-major trailing-dim merge: no HBM copy, no cast of the big tensors.
    yhat2 = yhat.reshape(B, LC)
    y2 = y.reshape(B, LC)
    w2 = sw.reshape(B, 1)

    # One-hot f32 selector: sel[t*C + c, c] = 1 for t < LEN_SCORED, else 0.
    lane = jnp.arange(LC)
    sel = (((lane[:, None] % C) == jnp.arange(_LANES)[None, :])
           & ((lane[:, None] // C) < LEN_SCORED)).astype(jnp.float32)

    # Batch tiling: single shot for small B, else a pipelined grid over batch
    # tiles, optionally split across TensorCores via a leading "parallel" axis.
    if B <= batch_tile:
        tb, nsplit, nt = B, 1, 1
    else:
        assert batch_tile % 8 == 0
        tb = batch_tile
        total_tiles = pl.cdiv(B, tb)
        nsplit = num_splits if total_tiles >= num_splits else 1
        nt = pl.cdiv(total_tiles, nsplit)

    b_pad = nsplit * nt * tb
    if b_pad != B:
        # Zero rows + zero weights contribute nothing; keeps every block full.
        pad = b_pad - B
        yhat2 = jnp.pad(yhat2, ((0, pad), (0, 0)))
        y2 = jnp.pad(y2, ((0, pad), (0, 0)))
        w2 = jnp.pad(w2, ((0, pad), (0, 0)))

    partial = pl.pallas_call(
        _colwise_loss_kernel,
        out_shape=jax.ShapeDtypeStruct((nsplit, 1, _LANES), jnp.float32),
        grid_spec=pltpu.PrefetchScalarGridSpec(
            num_scalar_prefetch=0,
            grid=(nsplit, nt),
            in_specs=[
                pl.BlockSpec((tb, LC), lambda s, t: (s * nt + t, 0)),      # yhat
                pl.BlockSpec((tb, LC), lambda s, t: (s * nt + t, 0)),      # y
                pl.BlockSpec((tb, 1), lambda s, t: (s * nt + t, 0)),       # w
                pl.BlockSpec((LC, _LANES), lambda s, t: (0, 0)),           # selector
            ],
            out_specs=pl.BlockSpec((1, 1, _LANES), lambda s, t: (s, 0, 0)),
        ),
        compiler_params=pltpu.CompilerParams(
            dimension_semantics=("parallel", "arbitrary")),
    )(yhat2, y2, w2, sel)

    # Tiny finalize (5 columns) in plain JAX: combine splits, divide, sqrt, weight.
    sse = jnp.sum(partial[:, 0, :C], axis=0)                     # (C,)
    denom = jnp.sum(sw) * jnp.float32(LEN_SCORED)
    rmse = jnp.sqrt(sse / denom)
    return jnp.sum(rmse * cw) / jnp.float32(NUM_COLS)


def ref_colwise_loss(yhat, y, column_weight=None, sample_weight=None):
    """Pure-JAX reference mirroring the PyTorch forward exactly (f32 math)."""
    B = yhat.shape[0]
    sw = (jnp.ones((B,), jnp.float32) if sample_weight is None
          else jnp.asarray(sample_weight, jnp.float32))
    yhat = yhat.astype(jnp.float32)
    y = y.astype(jnp.float32)
    score = jnp.float32(0.0)
    for i in range(NUM_COLS):
        d = yhat[:, :LEN_SCORED, i] - y[:, :LEN_SCORED, i]
        per_sample = jnp.mean(d * d, axis=1)
        base = jnp.sqrt(jnp.sum(sw * per_sample) / jnp.sum(sw))
        s = base / NUM_COLS
        if column_weight is not None:
            s = s * column_weight[i]
        score = score + s
    return score


if __name__ == "__main__":
    key = jax.random.PRNGKey(0)
    k1, k2, k3 = jax.random.split(key, 3)

    # Small OpenVaccine-like shape.
    B, L, C = 8, 107, NUM_COLS
    yhat = jax.random.normal(k1, (B, L, C), dtype=jnp.float32)
    y = jax.random.normal(k2, (B, L, C), dtype=jnp.float32)
    column_weight = jnp.array([1.0, 0.8, 0.6, 0.4, 0.2], dtype=jnp.float32)
    sample_weight = jax.random.uniform(k3, (B,), dtype=jnp.float32) + 0.5

    # 1) weighted, single-shot path
    out = jax.block_until_ready(colwise_loss(yhat, y, column_weight, sample_weight))
    ref = ref_colwise_loss(yhat, y, column_weight, sample_weight)
    assert jnp.abs(out - ref) < 1e-4, (out, ref)

    # 2) no weights
    out2 = jax.block_until_ready(colwise_loss(yhat, y))
    ref2 = ref_colwise_loss(yhat, y)
    assert jnp.abs(out2 - ref2) < 1e-4, (out2, ref2)

    # 3) bf16 inputs (kernel subtracts in bf16, squares/accumulates in f32)
    yhat_bf, y_bf = yhat.astype(jnp.bfloat16), y.astype(jnp.bfloat16)
    out3 = jax.block_until_ready(colwise_loss(yhat_bf, y_bf, column_weight, sample_weight))
    ref3 = ref_colwise_loss(yhat_bf, y_bf, column_weight, sample_weight)
    assert jnp.abs(out3 - ref3) < 2e-3, (out3, ref3)

    # 4) larger batch exercising the tiled grid, the parallel split and padding
    kb1, kb2, kb3 = jax.random.split(jax.random.PRNGKey(1), 3)
    Bb = 48
    yhat_b = jax.random.normal(kb1, (Bb, L, C), dtype=jnp.float32)
    y_b = jax.random.normal(kb2, (Bb, L, C), dtype=jnp.float32)
    sw_b = jax.random.uniform(kb3, (Bb,), dtype=jnp.float32) + 0.5
    out4 = jax.block_until_ready(
        colwise_loss(yhat_b, y_b, column_weight, sw_b, batch_tile=16, num_splits=2))
    ref4 = ref_colwise_loss(yhat_b, y_b, column_weight, sw_b)
    assert jnp.abs(out4 - ref4) < 1e-4, (out4, ref4)

    print("KERNEL_OK")
</pallas_src>

<mosaic_0001>
module attributes {stable_mosaic.version = 11 : i64} {
  func.func @_colwise_loss_kernel(%arg0: i32, %arg1: i32, %arg2: memref<8x535xf32, #tpu.memory_space<vmem>>, %arg3: memref<8x535xf32, #tpu.memory_space<vmem>>, %arg4: memref<8x1xf32, #tpu.memory_space<vmem>>, %arg5: memref<535x128xf32, #tpu.memory_space<vmem>>, %arg6: memref<1x1x128xf32, #tpu.memory_space<vmem>>) attributes {dimension_semantics = [#tpu.dimension_semantics<parallel>, #tpu.dimension_semantics<arbitrary>], iteration_bounds = array<i64: 1, 1>, scalar_prefetch = 0 : i64, scratch_operands = 0 : i64, tpu.core_type = #tpu.core_type<tc>, window_params = [{transform_indices = @transform_0, window_bounds = array<i64: 8, 535>}, {transform_indices = @transform_1, window_bounds = array<i64: 8, 535>}, {transform_indices = @transform_2, window_bounds = array<i64: 8, 1>}, {pipeline_mode = #tpu.pipeline_mode<synchronous>, transform_indices = @transform_3, window_bounds = array<i64: 535, 128>}, {transform_indices = @transform_4, window_bounds = array<i64: 1, 1, 128>}]} {
    %c0_i32 = arith.constant 0 : i32
    %0 = arith.cmpi eq, %arg1, %c0_i32 : i32
    %1 = arith.extui %0 : i1 to i32
    %c0_i32_0 = arith.constant 0 : i32
    %2 = arith.cmpi ne, %1, %c0_i32_0 : i32
    scf.if %2 {
      %cst_15 = arith.constant 0.000000e+00 : f32
      %18 = vector.broadcast %cst_15 : f32 to vector<1x1x128xf32>
      %c0_16 = arith.constant 0 : index
      %c0_17 = arith.constant 0 : index
      %c0_18 = arith.constant 0 : index
      %19 = vector.load %arg6[%c0_16, %c0_17, %c0_18] : memref<1x1x128xf32, #tpu.memory_space<vmem>>, vector<1x1x128xf32>
      tpu.vector_store %arg6[%c0_16, %c0_17, %c0_18], %18 {strides = array<i32>} : memref<1x1x128xf32, #tpu.memory_space<vmem>>, vector<1x1x128xf32>,
    } else {
    }
    %c0 = arith.constant 0 : index
    %c0_1 = arith.constant 0 : index
    %3 = vector.load %arg2[%c0, %c0_1] : memref<8x535xf32, #tpu.memory_space<vmem>>, vector<8x535xf32>
    %c0_2 = arith.constant 0 : index
    %c0_3 = arith.constant 0 : index
    %4 = vector.load %arg3[%c0_2, %c0_3] : memref<8x535xf32, #tpu.memory_space<vmem>>, vector<8x535xf32>
    %5 = arith.subf %3, %4 : vector<8x535xf32>
    %6 = arith.mulf %5, %5 : vector<8x535xf32>
    %c0_4 = arith.constant 0 : index
    %c0_5 = arith.constant 0 : index
    %7 = vector.load %arg5[%c0_4, %c0_5] : memref<535x128xf32, #tpu.memory_space<vmem>>, vector<535x128xf32>
    %cst = arith.constant dense<0.000000e+00> : vector<8x128xf32>
    %8 = tpu.matmul %6, %7, %cst {dimension_numbers = #tpu.dot_dimension_numbers<[1], [0], [0], [1], [0, 0, 1, 1], [], []>, precision = #tpu.contract_precision<fp32>} : vector<8x535xf32>, vector<535x128xf32>, vector<8x128xf32> -> vector<8x128xf32>
    %c0_6 = arith.constant 0 : index
    %c0_7 = arith.constant 0 : index
    %c0_8 = arith.constant 0 : index
    %9 = vector.load %arg6[%c0_6, %c0_7, %c0_8] : memref<1x1x128xf32, #tpu.memory_space<vmem>>, vector<1x1x128xf32>
    %c0_9 = arith.constant 0 : index
    %c0_10 = arith.constant 0 : index
    %10 = vector.load %arg4[%c0_9, %c0_10] : memref<8x1xf32, #tpu.memory_space<vmem>>, vector<8x1xf32>
    %11 = vector.broadcast %10 : vector<8x1xf32> to vector<8x128xf32>
    %12 = arith.mulf %8, %11 : vector<8x128xf32>
    %cst_11 = arith.constant dense<0.000000e+00> : vector<128xf32>
    %13 = vector.multi_reduction <add>, %12, %cst_11 [0] : vector<8x128xf32> to vector<128xf32>
    %14 = vector.shape_cast %13 : vector<128xf32> to vector<1x128xf32>
    %15 = vector.shape_cast %14 : vector<1x128xf32> to vector<1x1x128xf32>
    %16 = arith.addf %9, %15 : vector<1x1x128xf32>
    %c0_12 = arith.constant 0 : index
    %c0_13 = arith.constant 0 : index
    %c0_14 = arith.constant 0 : index
    %17 = vector.load %arg6[%c0_12, %c0_13, %c0_14] : memref<1x1x128xf32, #tpu.memory_space<vmem>>, vector<1x1x128xf32>
    tpu.vector_store %arg6[%c0_12, %c0_13, %c0_14], %16 {strides = array<i32>} : memref<1x1x128xf32, #tpu.memory_space<vmem>>, vector<1x1x128xf32>,
    return
  }
  func.func @transform_0(%arg0: i32, %arg1: i32) -> (i32, i32) {
    %c1_i32 = arith.constant 1 : i32
    %0 = arith.muli %arg0, %c1_i32 : i32
    %1 = arith.addi %0, %arg1 : i32
    %c0_i32 = arith.constant 0 : i32
    %c0_i32_0 = arith.constant 0 : i32
    return %1, %c0_i32 : i32, i32
  }
  func.func @transform_1(%arg0: i32, %arg1: i32) -> (i32, i32) {
    %c1_i32 = arith.constant 1 : i32
    %0 = arith.muli %arg0, %c1_i32 : i32
    %1 = arith.addi %0, %arg1 : i32
    %c0_i32 = arith.constant 0 : i32
    %c0_i32_0 = arith.constant 0 : i32
    return %1, %c0_i32 : i32, i32
  }
  func.func @transform_2(%arg0: i32, %arg1: i32) -> (i32, i32) {
    %c1_i32 = arith.constant 1 : i32
    %0 = arith.muli %arg0, %c1_i32 : i32
    %1 = arith.addi %0, %arg1 : i32
    %c0_i32 = arith.constant 0 : i32
    %c0_i32_0 = arith.constant 0 : i32
    return %1, %c0_i32 : i32, i32
  }
  func.func @transform_3(%arg0: i32, %arg1: i32) -> (i32, i32) {
    %c0_i32 = arith.constant 0 : i32
    %c0_i32_0 = arith.constant 0 : i32
    %c0_i32_1 = arith.constant 0 : i32
    return %c0_i32, %c0_i32_0 : i32, i32
  }
  func.func @transform_4(%arg0: i32, %arg1: i32) -> (i32, i32, i32) {
    %c0_i32 = arith.constant 0 : i32
    %c0_i32_0 = arith.constant 0 : i32
    %c0_i32_1 = arith.constant 0 : i32
    return %arg0, %c0_i32, %c0_i32_0 : i32, i32, i32
  }
}

</mosaic_0001>

<bundles_post_ra>
// kernel: tpu_custom_call.1
= control target key start
LH: loop header
LB: loop body
LE: loop exit
PB: predicated region body
PF: predicated region fallthrough
CT: control target
= control target key end

     0   :  { %9 = vsyncpa [#allocation3], 0  ;;  %s2963_s0 = inlined_call_operand.hbm [shape: f32[8,535], index: 0, kind: input, shape index: {}]   ;;  %s2964_s1 = inlined_call_operand.hbm [shape: f32[8,535], index: 1, kind: input, shape index: {}]   ;;  %s2965_s2 = inlined_call_operand.vmem [shape: f32[8,1], index: 2, kind: input, shape index: {}]   ;;  %s2966_s3 = inlined_call_operand.hbm [shape: f32[535,128], index: 3, kind: input, shape index: {}]   ;;  %s2967_s4 = inlined_call_operand.hbm [shape: f32[1,1,128], index: 4, kind: output, shape index: {}]  }
   0x1   :  { %10 = vsyncpa [#allocation6], 0  ;;  %s36_s17 = sshll.u32 %s2964_s1, 4  ;;  %s37_s17 = int_to_ptr.hbm [resolvable:$true] %s36_s17 }
   0x2   :  { %11 = vsyncpa [#allocation4], 0  ;;  %s1875_s18 = smov [#allocation5]   ;;  %s21_s22 = sshll.u32 %s2963_s0, 4  ;;  %s22_s22 = int_to_ptr.hbm [resolvable:$true] %s21_s22 }
   0x3   :  { %s38_s19 = sshll.u32 %s1875_s18, 4  ;;  %s1876_s23 = smov [#allocation2]   ;;  %s39_s19 = int_to_ptr.vmem [resolvable:$true] %s38_s19 }
   0x4   :  { %41 = dma.hbm_to_vmem [thread:$0]  %s37_s17, 640, %s39_s19, [#allocation6]  }
   0x5   :  { %s23_s24 = sshll.u32 %s1876_s23, 4  ;;  %s54_s27 = sshll.u32 %s2966_s3, 4  ;;  %s24_s24 = int_to_ptr.vmem [resolvable:$true] %s23_s24  ;;  %s55_s27 = int_to_ptr.hbm [resolvable:$true] %s54_s27 }
   0x6   :  { %26 = dma.hbm_to_vmem [thread:$0]  %s22_s22, 640, %s24_s24, [#allocation3]  }
   0x7   :  { %s1877_s1 = smov [#allocation7]   ;;  %s1878_s29 = smov 128  }
   0x8   :  { %s56_s28 = sshll.u32 %s1877_s1, 4  ;;  %s1879_s30 = smov 8   ;;  %s57_s28 = int_to_ptr.vmem [resolvable:$true] %s56_s28 }
   0x9   :  { %62 = dma.hbm_to_vmem [thread:$0]  %s55_s27, 8576, %s57_s28, [#allocation6], %s1878_s29, %s1878_s29, %s1879_s30  }
   0xa   :  { %1869 = dma.done.wait [#allocation3], 640  }
   0xb   :  { %1870 = vsyncadd [#allocation3], 4294966656 }
   0xc   :  { %1871 = dma.done.wait [#allocation6], 9216  }
   0xd   :  { %1872 = vsyncadd [#allocation6], 4294958080  ;;  %v128_v0 = vld [vmem:[#allocation7 + $0x78] sm:$0xff]  ;;  %v127_v1 = vld [vmem:[#allocation7 + $0x70] sm:$0xff]  ;;  %vm180_vm0 = vcmask 187392   ;;  %vm184_vm1 = vcmask 1046528  }
   0xe   :  { %v126_v2 = vld [vmem:[#allocation7 + $0x68] sm:$0xff]  ;;  %v1917_v3 = vand.u32 4294901760, %v128_v0  ;;  %v1919_v4 = vand.u32 4294901760, %v127_v1  ;;  %v125_v6 = vld [vmem:[#allocation7 + $0x60] sm:$0xff]  ;;  %v124_v7 = vld [vmem:[#allocation7 + $0x58] sm:$0xff]  ;;  %s1747_s8 = sshll.u32 %s2967_s4, 4  ;;  %s1748_s8 = int_to_ptr.hbm [resolvable:$true] %s1747_s8 }
   0xf   :  { %v1921_v5 = vand.u32 4294901760, %v126_v2  ;;  %v123_v8 = vld [vmem:[#allocation7 + $0x50] sm:$0xff]  ;;  %v1923_v9 = vand.u32 4294901760, %v125_v6  ;;  %v1925_v10 = vand.u32 4294901760, %v124_v7  ;;  %v122_v12 = vld [vmem:[#allocation7 + $0x48] sm:$0xff]  ;;  %v121_v13 = vld [vmem:[#allocation7 + $0x40] sm:$0xff] }
  0x10   :  { %v1927_v11 = vand.u32 4294901760, %v123_v8  ;;  %189 = vmatpush.msra.mxu0 %v1917_v3  ;;  %v1931_v14 = vsub.f32 %v128_v0, %v1917_v3  ;;  %v1934_v15 = vsub.f32 %v127_v1, %v1919_v4  ;;  %385 = vmatpush.msra.mxu3 %v1917_v3  ;;  %v1940_v17 = vand.u32 4294901760, %v122_v12  ;;  %v120_v18 = vld [vmem:[#allocation7 + $0x38] sm:$0xff]  ;;  %v119_v26 = vld [vmem:[#allocation7 + $0x30] sm:$0xff]  ;;  %v118_v34 = vld [vmem:[#allocation7 + $0x28] sm:$0xff] }
  0x11   :  { %v1938_v16 = vsub.f32 %v126_v2, %v1921_v5  ;;  %v1943_v19 = vsub.f32 %v125_v6, %v1923_v9  ;;  %v1946_v20 = vsub.f32 %v124_v7, %v1925_v10  ;;  %v1956_v25 = vand.u32 4294901760, %v121_v13  ;;  %v117_v42 = vld [vmem:[#allocation7 + $0x20] sm:$0xff]  ;;  %v116_v48 = vld [vmem:[#allocation7 + $0x18] sm:$0xff]  ;;  %v115_v54 = vld [vmem:[#allocation7 + $0x10] sm:$0xff] }
  0x12   :  { %v1949_v21 = vsub.f32 %v123_v8, %v1927_v11  ;;  %191 = vmatpush.msra.mxu0 %v1919_v4  ;;  %332 = vmatpush.msra.mxu2 %v1931_v14  ;;  %v231_v22 = vand.u32 4294901760, %v1931_v14  ;;  %v2982_v23 = vand.u32 4294901760, %v1934_v15  ;;  %v1960_v28 = vand.u32 4294901760, %v120_v18  ;;  %v144_v59 = vld [vmem:[#allocation7 + $0xf8] sm:$0xff]  ;;  %v114_v61 = vld [vmem:[#allocation7 + $0x8] sm:$0xff]  ;;  %v113_v2 = vld [vmem:[#allocation7] sm:$0xff] }
  0x13   :  { %v2981_v24 = vand.u32 4294901760, %v1938_v16  ;;  %387 = vmatpush.msra.mxu3 %v1919_v4  ;;  %v2979_v27 = vand.u32 4294901760, %v1943_v19  ;;  %v1963_v29 = vsub.f32 %v122_v12, %v1940_v17  ;;  %v2977_v33 = vand.u32 4294901760, %v1946_v20  ;;  %v143_v6 = vld [vmem:[#allocation7 + $0xf0] sm:$0xff] }
  0x14   :  { %193 = vmatpush.msra.mxu0 %v1921_v5  ;;  %335 = vmatpush.msra.mxu2 %v1934_v15  ;;  %v232_v30 = vsub.f32 %v1931_v14, %v231_v22  ;;  %v238_v31 = vsub.f32 %v1934_v15, %v2982_v23  ;;  %v1978_v35 = vand.u32 4294901760, %v119_v26  ;;  %v2975_v36 = vand.u32 4294901760, %v1949_v21  ;;  %v135_v23 = vld [vmem:[#allocation7 + $0xb0] sm:$0xff] }
  0x15   :  { %v244_v32 = vsub.f32 %v1938_v16, %v2981_v24  ;;  %389 = vmatpush.msra.mxu3 %v1921_v5  ;;  %v250_v39 = vsub.f32 %v1943_v19, %v2979_v27  ;;  %v1987_v40 = vsub.f32 %v121_v13, %v1956_v25  ;;  %v1990_v41 = vand.u32 4294901760, %v118_v34 }
  0x16   :  { %195 = vmatpush.msra.mxu0 %v1923_v9  ;;  %v233_v37 = vand.u32 4294901760, %v232_v30  ;;  %338 = vmatpush.msra.mxu2 %v1938_v16  ;;  %v239_v38 = vand.u32 4294901760, %v238_v31  ;;  %v256_v44 = vsub.f32 %v1946_v20, %v2977_v33  ;;  %v2974_v45 = vand.u32 4294901760, %v1963_v29 }
  0x17   :  { %391 = vmatpush.msra.mxu3 %v1923_v9  ;;  %v245_v43 = vand.u32 4294901760, %v244_v32  ;;  %v1998_v46 = vsub.f32 %v120_v18, %v1960_v28  ;;  %v262_v47 = vsub.f32 %v1949_v21, %v2975_v36  ;;  %v251_v49 = vand.u32 4294901760, %v250_v39  ;;  %v142_v32 = vld [vmem:[#allocation7 + $0xe8] sm:$0xff] }
  0x18   :  { %197 = vmatpush.msra.mxu0 %v1925_v10  ;;  %234 = vmatpush.msra.mxu1 %v233_v37  ;;  %v2006_v50 = vand.u32 4294901760, %v117_v42  ;;  %v2973_v51 = vand.u32 4294901760, %v1987_v40  ;;  %v2010_v52 = vsub.f32 %v119_v26, %v1978_v35  ;;  %v2015_v53 = vsub.f32 %v118_v34, %v1990_v41 }
  0x19   :  { %341 = vmatpush.msra.mxu2 %v1943_v19  ;;  %393 = vmatpush.msra.mxu3 %v1925_v10  ;;  %v257_v55 = vand.u32 4294901760, %v256_v44  ;;  %v268_v56 = vsub.f32 %v1963_v29, %v2974_v45  ;;  %v2021_v57 = vand.u32 4294901760, %v116_v48  ;;  %v2972_v58 = vand.u32 4294901760, %v1998_v46  ;;  %v141_v44 = vld [vmem:[#allocation7 + $0xe0] sm:$0xff] }
  0x1a   :  { %199 = vmatpush.msra.mxu0 %v1927_v11  ;;  %240 = vmatpush.msra.mxu1 %v239_v38  ;;  %v263_v60 = vand.u32 4294901760, %v262_v47  ;;  %v274_v62 = vsub.f32 %v1987_v40, %v2973_v51  ;;  %v2030_v63 = vand.u32 4294901760, %v115_v54  ;;  %v2970_v0 = vand.u32 4294901760, %v2010_v52  ;;  %v137_v45 = vld [vmem:[#allocation7 + $0xc0] sm:$0xff] }
  0x1b   :  { %344 = vmatpush.msra.mxu2 %v1946_v20  ;;  %395 = vmatpush.msra.mxu3 %v1927_v11  ;;  %v2034_v1 = vsub.f32 %v117_v42, %v2006_v50  ;;  %v2969_v7 = vand.u32 4294901760, %v2015_v53  ;;  %v2039_v8 = vand.u32 4294901760, %v144_v59  ;;  %v269_v12 = vand.u32 4294901760, %v268_v56 }
  0x1c   :  { %201 = vmatpush.msra.mxu0 %v1940_v17  ;;  %246 = vmatpush.msra.mxu1 %v245_v43  ;;  %v280_v13 = vsub.f32 %v1998_v46, %v2972_v58  ;;  %v2045_v18 = vand.u32 4294901760, %v114_v61  ;;  %v2048_v26 = vsub.f32 %v116_v48, %v2021_v57  ;;  %v2052_v30 = vand.u32 4294901760, %v113_v2 }
  0x1d   :  { %347 = vmatpush.msra.mxu2 %v1949_v21  ;;  %397 = vmatpush.msra.mxu3 %v1940_v17  ;;  %3016 = vst [vmem:[#allocation12_spill] sm:$0xff] %v2039_v8  ;;  %v2054_v31 = vand.u32 4294901760, %v143_v6  ;;  %v275_v34 = vand.u32 4294901760, %v274_v62  ;;  %v286_v37 = vsub.f32 %v2010_v52, %v2970_v0  ;;  %v2968_v38 = vand.u32 4294901760, %v2034_v1 }
  0x1e   :  { %203 = vmatpush.msra.mxu0 %v1956_v25  ;;  %252 = vmatpush.msra.mxu1 %v251_v49  ;;  %3017 = vst [vmem:[#allocation13_spill] sm:$0xff] %v2045_v18  ;;  %v2062_v39 = vsub.f32 %v115_v54, %v2030_v63  ;;  %v292_v42 = vsub.f32 %v2015_v53, %v2969_v7  ;;  %v281_v47 = vand.u32 4294901760, %v280_v13  ;;  %v2971_v48 = vand.u32 4294901760, %v2048_v26  ;;  %v139_v13 = vld [vmem:[#allocation7 + $0xd0] sm:$0xff] }
  0x1f   :  { %350 = vmatpush.msra.mxu2 %v1963_v29  ;;  %399 = vmatpush.msra.mxu3 %v1956_v25  ;;  %3018 = vst [vmem:[#allocation14_spill] sm:$0xff] %v2052_v30  ;;  %v2070_v43 = vsub.f32 %v144_v59, %v2039_v8  ;;  %v2075_v49 = vsub.f32 %v114_v61, %v2045_v18  ;;  %v2077_v54 = vand.u32 4294901760, %v142_v32  ;;  %v140_v59 = vld [vmem:[#allocation7 + $0xd8] sm:$0xff]  ;;  %v2118_v51 = vand.u32 4294901760, %v139_v13 }
  0x20   :  { %205 = vmatpush.msra.mxu0 %v1960_v28  ;;  %258 = vmatpush.msra.mxu1 %v257_v55  ;;  %v2082_v55 = vsub.f32 %v113_v2, %v2052_v30  ;;  %v2085_v56 = vsub.f32 %v143_v6, %v2054_v31  ;;  %v298_v61 = vsub.f32 %v2034_v1, %v2968_v38  ;;  %v2976_v62 = vand.u32 4294901760, %v2062_v39 }
  0x21   :  { %353 = vmatpush.msra.mxu2 %v1987_v40  ;;  %401 = vmatpush.msra.mxu3 %v1960_v28  ;;  %v293_v2 = vand.u32 4294901760, %v292_v42  ;;  %v2978_v6 = vand.u32 4294901760, %v2070_v43  ;;  %v2103_v38 = vsub.f32 %v142_v32, %v2077_v54  ;;  %v2105_v7 = vand.u32 4294901760, %v140_v59  ;;  %v138_v42 = vld [vmem:[#allocation7 + $0xc8] sm:$0xff] }
  0x22   :  { %207 = vmatpush.msra.mxu0 %v1978_v35  ;;  %264 = vmatpush.msra.mxu1 %v263_v60  ;;  %v287_v60 = vand.u32 4294901760, %v286_v37  ;;  %v2980_v37 = vand.u32 4294901760, %v2075_v49  ;;  %v2985_v0 = vand.u32 4294901760, %v2082_v55  ;;  %v310_v32 = vsub.f32 %v2062_v39, %v2976_v62 }
  0x23   :  { %356 = vmatpush.msra.mxu2 %v1998_v46  ;;  %403 = vmatpush.msra.mxu3 %v1978_v35  ;;  %3019 = vst [vmem:[#allocation15_spill] sm:$0xff] %v2103_v38  ;;  %v573_v36 = vsub.f32 %v2070_v43, %v2978_v6  ;;  %v2133_v33 = vsub.f32 %v140_v59, %v2105_v7  ;;  %v2140_v27 = vand.u32 4294901760, %v137_v45 }
  0x24   :  { %209 = vmatpush.msra.mxu0 %v1990_v41  ;;  %270 = vmatpush.msra.mxu1 %v269_v12  ;;  %v2092_v12 = vand.u32 4294901760, %v141_v44  ;;  %v322_v59 = vsub.f32 %v2082_v55, %v2985_v0  ;;  %v2148_v24 = vsub.f32 %v139_v13, %v2118_v51  ;;  %v3020_v0 = vand.u32 4294901760, %v2103_v38 }
  0x25   :  { %359 = vmatpush.msra.mxu2 %v2010_v52  ;;  %405 = vmatpush.msra.mxu3 %v1990_v41 }
  0x26   :  { %211 = vmatpush.msra.mxu0 %v2006_v50  ;;  %276 = vmatpush.msra.mxu1 %v275_v34  ;;  %v304_v34 = vsub.f32 %v2048_v26, %v2971_v48  ;;  %v299_v48 = vand.u32 4294901760, %v298_v61  ;;  %v2116_v58 = vsub.f32 %v141_v44, %v2092_v12  ;;  %v316_v44 = vsub.f32 %v2075_v49, %v2980_v37 }
  0x27   :  { %362 = vmatpush.msra.mxu2 %v2015_v53  ;;  %407 = vmatpush.msra.mxu3 %v2006_v50  ;;  %v585_v13 = vsub.f32 %v2103_v38, %v3020_v0  ;;  %v323_v0 = vand.u32 4294901760, %v322_v59  ;;  %v3023_v38 = vand.u32 4294901760, %v1938_v16  ;;  %v3024_v59 = vand.u32 4294901760, %v2133_v33 }
  0x28   :  { %213 = vmatpush.msra.mxu0 %v2021_v57  ;;  %282 = vmatpush.msra.mxu1 %v281_v47  ;;  %v2983_v47 = vand.u32 4294901760, %v2085_v56  ;;  %v305_v61 = vand.u32 4294901760, %v304_v34  ;;  %v311_v34 = vand.u32 4294901760, %v310_v32  ;;  %v98_v32 = vld [vmem:[#allocation5] sm:$0xff]  ;;  %v3022_v37 = vand.u32 4294901760, %v2116_v58 }
  0x29   :  { %365 = vmatpush.msra.mxu2 %v2034_v1  ;;  %409 = vmatpush.msra.mxu3 %v2021_v57  ;;  %v3025_v16 = vand.u32 4294901760, %v1943_v19  ;;  %v3027_v19 = vand.u32 4294901760, %v1946_v20  ;;  %v3028_v20 = vand.u32 4294901760, %v1949_v21  ;;  %v3029_v21 = vand.u32 4294901760, %v1963_v29 }
  0x2a   :  { %215 = vmatpush.msra.mxu0 %v2030_v63  ;;  %288 = vmatpush.msra.mxu1 %v287_v60  ;;  %v2125_v60 = vand.u32 4294901760, %v138_v42  ;;  %v579_v6 = vsub.f32 %v2085_v56, %v2983_v47  ;;  %v574_v47 = vand.u32 4294901760, %v573_v36 }
  0x2b   :  { %368 = vmatpush.msra.mxu2 %v2048_v26  ;;  %411 = vmatpush.msra.mxu3 %v2030_v63 }
  0x2c   :  { %217 = vmatpush.msra.mxu0 %v2045_v18  ;;  %294 = vmatpush.msra.mxu1 %v293_v2  ;;  %v136_v2 = vld [vmem:[#allocation7 + $0xb8] sm:$0xff]  ;;  %v2154_v62 = vsub.f32 %v138_v42, %v2125_v60  ;;  %v580_v36 = vand.u32 4294901760, %v579_v6  ;;  %v2167_v42 = vsub.f32 %v137_v45, %v2140_v27  ;;  %v133_v6 = vld [vmem:[#allocation7 + $0xa0] sm:$0xff] }
  0x2d   :  { %371 = vmatpush.msra.mxu2 %v2062_v39  ;;  %413 = vmatpush.msra.mxu3 %v2045_v18  ;;  %v317_v18 = vand.u32 4294901760, %v316_v44  ;;  %v2161_v14 = vand.u32 4294901760, %v136_v2  ;;  %v134_v44 = vld [vmem:[#allocation7 + $0xa8] sm:$0xff] }
  0x2e   :  { %219 = vmatpush.msra.mxu0 %v2052_v30  ;;  %300 = vmatpush.msra.mxu1 %v299_v48  ;;  %v93_v48 = vld [vmem:[#allocation2] sm:$0xff]  ;;  %v2993_v45 = vand.u32 4294901760, %v2154_v62 }
  0x2f   :  { %374 = vmatpush.msra.mxu2 %v2075_v49  ;;  %415 = vmatpush.msra.mxu3 %v2052_v30  ;;  %v591_v30 = vsub.f32 %v2116_v58, %v3022_v37  ;;  %v2184_v37 = vsub.f32 %v136_v2, %v2161_v14 }
  0x30   :  { %426 = vmatpush.msrb.mxu0 %v231_v22  ;;  %306 = vmatpush.msra.mxu1 %v305_v61  ;;  %v3021_v22 = vand.u32 4294901760, %v1934_v15  ;;  %v2169_v61 = vand.u32 4294901760, %v135_v23  ;;  %v2186_v15 = vand.u32 4294901760, %v134_v44 }
  0x31   :  { %377 = vmatpush.msra.mxu2 %v2082_v55  ;;  %575 = vmatpush.msrb.mxu3 %v574_v47  ;;  %v132_v47 = vld [vmem:[#allocation7 + $0x98] sm:$0xff] }
  0x32   :  { %430 = vmatpush.msrb.mxu0 %v3021_v22  ;;  %312 = vmatpush.msra.mxu1 %v311_v34  ;;  %v103_v22 = vsub.f32 %v93_v48, %v98_v32  ;;  %v586_v34 = vand.u32 4294901760, %v585_v13  ;;  %v592_v48 = vand.u32 4294901760, %v591_v30  ;;  %v3026_v32 = vand.u32 4294901760, %v2148_v24 }
  0x33   :  { %530 = vmatpush.msrb.mxu2 %v2039_v8  ;;  %v597_v8 = vsub.f32 %v2133_v33, %v3024_v59  ;;  %581 = vmatpush.msrb.mxu3 %v580_v36  ;;  %v2198_v13 = vand.u32 4294901760, %v133_v6  ;;  %v2992_v36 = vand.u32 4294901760, %v2184_v37 }
  0x34   :  { %434 = vmatpush.msrb.mxu0 %v3023_v38  ;;  %318 = vmatpush.msra.mxu1 %v317_v18  ;;  %v2991_v38 = vand.u32 4294901760, %v2167_v42  ;;  %v2192_v18 = vsub.f32 %v135_v23, %v2169_v61  ;;  %v603_v2 = vsub.f32 %v2148_v24, %v3026_v32  ;;  %v108_v59 = vmul.f32 %v103_v22, %v103_v22 }
  0x35   :  { %532 = vmatpush.msrb.mxu2 %v2054_v31  ;;  %v609_v23 = vsub.f32 %v2154_v62, %v2993_v45  ;;  %587 = vmatpush.msrb.mxu3 %v586_v34  ;;  %v598_v30 = vand.u32 4294901760, %v597_v8  ;;  %v131_v34 = vld [vmem:[#allocation7 + $0x90] sm:$0xff]  ;;  %v129_v45 = vld [vmem:[#allocation7 + $0x80] sm:$0xff] }
  0x36   :  { %438 = vmatpush.msrb.mxu0 %v3025_v16  ;;  %324 = vmatpush.msra.mxu1 %v323_v0  ;;  %v2209_v0 = vsub.f32 %v134_v44, %v2186_v15  ;;  %v2211_v16 = vand.u32 4294901760, %v132_v47  ;;  %v626_v22 = vand.u32 4294901760, %v2192_v18  ;;  %v604_v8 = vand.u32 4294901760, %v603_v2 }
  0x37   :  { %534 = vmatpush.msrb.mxu2 %v2077_v54  ;;  %593 = vmatpush.msrb.mxu3 %v592_v48  ;;  %v2222_v44 = vsub.f32 %v133_v6, %v2198_v13  ;;  %v2224_v32 = vand.u32 4294901760, %v108_v59  ;;  %v621_v48 = vsub.f32 %v2184_v37, %v2992_v36  ;;  %v2234_v2 = vand.u32 4294901760, %v131_v34 }
  0x38   :  { %442 = vmatpush.msrb.mxu0 %v3027_v19  ;;  %493 = vmatpush.msrb.mxu1 %v1917_v3  ;;  %v615_v3 = vsub.f32 %v2167_v42, %v2991_v38  ;;  %v130_v19 = vld [vmem:[#allocation7 + $0x88] sm:$0xff]  ;;  %v99_v38 = vld [vmem:[#allocation5 + $0x8] sm:$0xff]  ;;  %v632_v6 = vand.u32 4294901760, %v2209_v0  ;;  %v2237_v29 = vsub.f32 %v132_v47, %v2211_v16 }
  0x39   :  { %536 = vmatpush.msrb.mxu2 %v2092_v12  ;;  %599 = vmatpush.msrb.mxu3 %v598_v30  ;;  %v627_v30 = vsub.f32 %v2192_v18, %v626_v22  ;;  %v2248_v36 = vsub.f32 %v108_v59, %v2224_v32  ;;  %v2250_v47 = vand.u32 4294901760, %v130_v19 }
  0x3a   :  { %446 = vmatpush.msrb.mxu0 %v3028_v20  ;;  %495 = vmatpush.msrb.mxu1 %v1919_v4  ;;  %v610_v4 = vand.u32 4294901760, %v609_v23  ;;  %v94_v20 = vld [vmem:[#allocation2 + $0x8] sm:$0xff]  ;;  %v616_v23 = vand.u32 4294901760, %v615_v3  ;;  %v633_v3 = vsub.f32 %v2209_v0, %v632_v6  ;;  %v644_v59 = vand.u32 4294901760, %v2237_v29 }
  0x3b   :  { %538 = vmatpush.msrb.mxu2 %v2105_v7  ;;  %605 = vmatpush.msrb.mxu3 %v604_v8  ;;  %v2261_v8 = vsub.f32 %v131_v34, %v2234_v2  ;;  %v2274_v34 = vsub.f32 %v130_v19, %v2250_v47 }
  0x3c   :  { %450 = vmatpush.msrb.mxu0 %v3029_v21  ;;  %497 = vmatpush.msrb.mxu1 %v1921_v5  ;;  %v3030_v5 = vand.u32 4294901760, %v1987_v40  ;;  %v638_v21 = vand.u32 4294901760, %v2222_v44  ;;  %v104_v40 = vsub.f32 %v94_v20, %v99_v38  ;;  %v3032_v38 = vand.u32 4294901760, %v2010_v52 }
  0x3d   :  { %540 = vmatpush.msrb.mxu2 %v2118_v51  ;;  %611 = vmatpush.msrb.mxu3 %v610_v4  ;;  %v222_v20 = vand.u32 4294901760, %v2248_v36  ;;  %v3033_v52 = vand.u32 4294901760, %v2015_v53 }
  0x3e   :  { %454 = vmatpush.msrb.mxu0 %v3030_v5  ;;  %499 = vmatpush.msrb.mxu1 %v1923_v9  ;;  %v3031_v5 = vand.u32 4294901760, %v1998_v46  ;;  %v622_v9 = vand.u32 4294901760, %v621_v48  ;;  %v628_v46 = vand.u32 4294901760, %v627_v30  ;;  %v639_v4 = vsub.f32 %v2222_v44, %v638_v21 }
  0x3f   :  { %542 = vmatpush.msrb.mxu2 %v2125_v60  ;;  %617 = vmatpush.msrb.mxu3 %v616_v23  ;;  %v109_v48 = vmul.f32 %v104_v40, %v104_v40  ;;  %v645_v23 = vsub.f32 %v2237_v29, %v644_v59  ;;  %v650_v30 = vand.u32 4294901760, %v2261_v8  ;;  %v223_v19 = vsub.f32 %v2248_v36, %v222_v20 }
  0x40   :  { %458 = vmatpush.msrb.mxu0 %v3031_v5  ;;  %501 = vmatpush.msrb.mxu1 %v1925_v10  ;;  %v2266_v10 = vand.u32 4294901760, %v129_v45  ;;  %v3034_v5 = vand.u32 4294901760, %v2034_v1  ;;  %v656_v40 = vand.u32 4294901760, %v2274_v34 }
  0x41   :  { %544 = vmatpush.msrb.mxu2 %v2140_v27  ;;  %623 = vmatpush.msrb.mxu3 %v622_v9  ;;  %v2293_v9 = vand.u32 4294901760, %v109_v48  ;;  %v651_v1 = vsub.f32 %v2261_v8, %v650_v30 }
  0x42   :  { %462 = vmatpush.msrb.mxu0 %v3032_v38  ;;  %503 = vmatpush.msrb.mxu1 %v1927_v11  ;;  %v634_v11 = vand.u32 4294901760, %v633_v3  ;;  %v2288_v53 = vsub.f32 %v129_v45, %v2266_v10  ;;  %v3035_v3 = vand.u32 4294901760, %v2048_v26  ;;  %v3036_v45 = vand.u32 4294901760, %v2062_v39 }
  0x43   :  { %546 = vmatpush.msrb.mxu2 %v2161_v14  ;;  %629 = vmatpush.msrb.mxu3 %v628_v46  ;;  %v224_v26 = vand.u32 4294901760, %v223_v19  ;;  %v2311_v46 = vsub.f32 %v109_v48, %v2293_v9  ;;  %v3038_v39 = vand.u32 4294901760, %v2082_v55  ;;  %v3039_v55 = vld [vmem:[#allocation15_spill] sm:$0xff] }
  0x44   :  { %466 = vmatpush.msrb.mxu0 %v3033_v52  ;;  %505 = vmatpush.msrb.mxu1 %v1940_v17  ;;  %v640_v17 = vand.u32 4294901760, %v639_v4  ;;  %v662_v38 = vand.u32 4294901760, %v2288_v53  ;;  %v3037_v4 = vand.u32 4294901760, %v2075_v49 }
  0x45   :  { %548 = vmatpush.msrb.mxu2 %v2169_v61  ;;  %635 = vmatpush.msrb.mxu3 %v634_v11  ;;  %v563_v48 = vand.u32 4294901760, %v2311_v46  ;;  %v3041_v11 = vld [vmem:[#allocation13_spill] sm:$0xff] }
  0x46   :  { %470 = vmatpush.msrb.mxu0 %v3034_v5  ;;  %507 = vmatpush.msrb.mxu1 %v1956_v25  ;;  %v646_v25 = vand.u32 4294901760, %v645_v23  ;;  %v663_v52 = vsub.f32 %v2288_v53, %v662_v38  ;;  %v3043_v23 = vld [vmem:[#allocation12_spill] sm:$0xff]  ;;  %v3044_v5 = vld [vmem:[#allocation14_spill] sm:$0xff] }
  0x47   :  { %550 = vmatpush.msrb.mxu2 %v2186_v15  ;;  %641 = vmatpush.msrb.mxu3 %v640_v17  ;;  %v152_v17 = vld [vmem:[#allocation7 + $0x138] sm:$0xff] }
  0x48   :  { %474 = vmatpush.msrb.mxu0 %v3035_v3  ;;  %509 = vmatpush.msrb.mxu1 %v1960_v28  ;;  %v657_v28 = vsub.f32 %v2274_v34, %v656_v40 }
  0x49   :  { %552 = vmatpush.msrb.mxu2 %v2198_v13  ;;  %647 = vmatpush.msrb.mxu3 %v646_v25  ;;  %v151_v25 = vld [vmem:[#allocation7 + $0x130] sm:$0xff] }
  0x4a   :  { %478 = vmatpush.msrb.mxu0 %v3036_v45  ;;  %511 = vmatpush.msrb.mxu1 %v1978_v35  ;;  %v652_v35 = vand.u32 4294901760, %v651_v1  ;;  %v658_v49 = vand.u32 4294901760, %v657_v28 }
  0x4b   :  { %554 = vmatpush.msrb.mxu2 %v2211_v16  ;;  %225 = vmatmul.f32.vlgmr.msra.gmra.mxu0 %v224_v26  ;;  %v2473_v26 = vand.u32 4294901760, %v152_v17 }
  0x4c   :  { %482 = vmatpush.msrb.mxu0 %v3037_v4  ;;  %513 = vmatpush.msrb.mxu1 %v1990_v41  ;;  %v664_v41 = vand.u32 4294901760, %v663_v52  ;;  %v150_v4 = vld [vmem:[#allocation7 + $0x128] sm:$0xff] }
  0x4d   :  { %556 = vmatpush.msrb.mxu2 %v2234_v2  ;;  %653 = vmatpush.msrb.mxu3 %v652_v35 }
  0x4e   :  { %486 = vmatpush.msrb.mxu0 %v3038_v39  ;;  %515 = vmatpush.msrb.mxu1 %v2006_v50  ;;  %v564_v50 = vsub.f32 %v2311_v46, %v563_v48  ;;  %v2486_v39 = vand.u32 4294901760, %v151_v25 }
  0x4f   :  { %558 = vmatpush.msrb.mxu2 %v2250_v47  ;;  %659 = vmatpush.msrb.mxu3 %v658_v49  ;;  %v149_v49 = vld [vmem:[#allocation7 + $0x120] sm:$0xff] }
  0x50   :  { %673 = vmatpush.msra.mxu0 %v2070_v43  ;;  %517 = vmatpush.msrb.mxu1 %v2021_v57  ;;  %v3040_v57 = vand.u32 4294901760, %v2070_v43  ;;  %v3045_v43 = vand.u32 4294901760, %v3039_v55 }
  0x51   :  { %380 = vmatmul.f32.vlgmr.msra.gmra.mxu2 %v2248_v36  ;;  %419 = vmatmul.f32.vlgmr.msra.gmra.mxu3 %v222_v20  ;;  %v565_v36 = vand.u32 4294901760, %v564_v50  ;;  %v3047_v20 = vand.u32 4294901760, %v2133_v33 }
  0x52   :  { %676 = vmatpush.msra.mxu0 %v2085_v56  ;;  %519 = vmatpush.msrb.mxu1 %v2030_v63  ;;  %v3042_v63 = vand.u32 4294901760, %v2085_v56  ;;  %v3046_v56 = vand.u32 4294901760, %v2116_v58 }
  0x53   :  { %560 = vmatpush.msrb.mxu2 %v2266_v10  ;;  %665 = vmatpush.msrb.mxu3 %v664_v41 }
  0x54   :  { %679 = vmatpush.msra.mxu0 %v3039_v55  ;;  %521 = vmatpush.msrb.mxu1 %v3041_v11  ;;  %v2498_v55 = vand.u32 4294901760, %v150_v4  ;;  %v2502_v11 = vsub.f32 %v152_v17, %v2473_v26  ;;  %v176_v17 = vld [vmem:[#allocation7 + $0x1f8] sm:$0xff] }
  0x55   :  { %767 = vmatpush.msra.mxu2 %v3040_v57  ;;  %326 = vmatmul.f32.vlgmr.msra.gmra.mxu1 %v2224_v32 }
  0x56   :  { %682 = vmatpush.msra.mxu0 %v2116_v58  ;;  %834 = vmatpush.msra.mxu3 %v3043_v23  ;;  %v3048_v58 = vand.u32 4294901760, %v2148_v24 }
  0x57   :  { %771 = vmatpush.msra.mxu2 %v3042_v63  ;;  %523 = vmatpush.msrb.mxu1 %v3044_v5  ;;  %v2514_v5 = vsub.f32 %v151_v25, %v2486_v39  ;;  %v145_v25 = vld [vmem:[#allocation7 + $0x100] sm:$0xff] }
  0x58   :  { %685 = vmatpush.msra.mxu0 %v2133_v33  ;;  %836 = vmatpush.msra.mxu3 %v2054_v31  ;;  %v3049_v33 = vand.u32 4294901760, %v2154_v62 }
  0x59   :  { %726 = vmatpush.msra.mxu1 %v3043_v23  ;;  %775 = vmatpush.msra.mxu2 %v3045_v43 }
  0x5a   :  { %566 = vmatmul.f32.vlgmr.msrb.gmra.mxu2 %v565_v36  ;;  %688 = vmatpush.msra.mxu0 %v2148_v24  ;;  %v160_v24 = vld [vmem:[#allocation7 + $0x178] sm:$0xff]  ;;  %v2510_v36 = vand.u32 4294901760, %v149_v49 }
  0x5b   :  { %728 = vmatpush.msra.mxu1 %v2054_v31  ;;  %779 = vmatpush.msra.mxu2 %v3046_v56  ;;  %v3050_v31 = vand.u32 4294901760, %v2167_v42  ;;  %v147_v56 = vld [vmem:[#allocation7 + $0x110] sm:$0xff] }
  0x5c   :  { %838 = vmatpush.msra.mxu3 %v2077_v54  ;;  %488 = vmatmul.f32.vlgmr.msrb.gmra.mxu0 %v2224_v32 }
  0x5d   :  { %667 = vmatmul.f32.vlgmr.msrb.gmra.mxu3 %v2293_v9  ;;  %691 = vmatpush.msra.mxu0 %v2154_v62  ;;  %v158_v62 = vld [vmem:[#allocation7 + $0x168] sm:$0xff] }
  0x5e   :  { %730 = vmatpush.msra.mxu1 %v2077_v54  ;;  %783 = vmatpush.msra.mxu2 %v3047_v20  ;;  %v2387_v54 = vand.u32 4294901760, %v160_v24 }
  0x5f   :  { %840 = vmatpush.msra.mxu3 %v2092_v12  ;;  %525 = vmatmul.f32.vlgmr.msrb.gmra.mxu1 %v2224_v32  ;;  %v154_v32 = vld [vmem:[#allocation7 + $0x148] sm:$0xff] }
  0x60   :  { %694 = vmatpush.msra.mxu0 %v2167_v42  ;;  %732 = vmatpush.msra.mxu1 %v2092_v12  ;;  %v156_v42 = vld [vmem:[#allocation7 + $0x158] sm:$0xff] }
  0x61   :  { %787 = vmatpush.msra.mxu2 %v3048_v58  ;;  %842 = vmatpush.msra.mxu3 %v2105_v7 }
  0x62   :  { %697 = vmatpush.msra.mxu0 %v2184_v37  ;;  %734 = vmatpush.msra.mxu1 %v2105_v7  ;;  %v3051_v7 = vand.u32 4294901760, %v2184_v37 }
  0x63   :  { %791 = vmatpush.msra.mxu2 %v3049_v33  ;;  %844 = vmatpush.msra.mxu3 %v2118_v51 }
  0x64   :  { %700 = vmatpush.msra.mxu0 %v2192_v18  ;;  %736 = vmatpush.msra.mxu1 %v2118_v51  ;;  %v159_v51 = vld [vmem:[#allocation7 + $0x170] sm:$0xff] }
  0x65   :  { %795 = vmatpush.msra.mxu2 %v3050_v31  ;;  %846 = vmatpush.msra.mxu3 %v2125_v60  ;;  %v2394_v12 = vand.u32 4294901760, %v159_v51  ;;  %v155_v18 = vld [vmem:[#allocation7 + $0x150] sm:$0xff]  ;;  %v2998_v31 = vand.u32 4294901760, %v2502_v11 }
  0x66   :  { %703 = vmatpush.msra.mxu0 %v2209_v0  ;;  %738 = vmatpush.msra.mxu1 %v2125_v60  ;;  %v2401_v60 = vand.u32 4294901760, %v158_v62  ;;  %v2418_v0 = vand.u32 4294901760, %v156_v42 }
  0x67   :  { %799 = vmatpush.msra.mxu2 %v3051_v7  ;;  %848 = vmatpush.msra.mxu3 %v2140_v27  ;;  %v2414_v37 = vsub.f32 %v159_v51, %v2394_v12 }
  0x68   :  { %706 = vmatpush.msra.mxu0 %v2222_v44  ;;  %740 = vmatpush.msra.mxu1 %v2140_v27  ;;  %v157_v27 = vld [vmem:[#allocation7 + $0x160] sm:$0xff]  ;;  %v2429_v44 = vand.u32 4294901760, %v155_v18 }
  0x69   :  { %803 = vmatpush.msra.mxu2 %v626_v22  ;;  %850 = vmatpush.msra.mxu3 %v2161_v14  ;;  %v2425_v22 = vsub.f32 %v158_v62, %v2401_v60  ;;  %v2536_v62 = vand.u32 4294901760, %v147_v56 }
  0x6a   :  { %709 = vmatpush.msra.mxu0 %v2237_v29  ;;  %742 = vmatpush.msra.mxu1 %v2161_v14  ;;  %v2404_v14 = vsub.f32 %v160_v24, %v2387_v54  ;;  %v2441_v29 = vsub.f32 %v156_v42, %v2418_v0  ;;  %v2528_v24 = vsub.f32 %v150_v4, %v2498_v55 }
  0x6b   :  { %807 = vmatpush.msra.mxu2 %v632_v6  ;;  %852 = vmatpush.msra.mxu3 %v2169_v61  ;;  %v2540_v42 = vsub.f32 %v149_v49, %v2510_v36  ;;  %v2565_v4 = vsub.f32 %v147_v56, %v2536_v62 }
  0x6c   :  { %712 = vmatpush.msra.mxu0 %v2261_v8  ;;  %744 = vmatpush.msra.mxu1 %v2169_v61  ;;  %v2411_v61 = vand.u32 4294901760, %v157_v27  ;;  %v925_v8 = vand.u32 4294901760, %v2425_v22  ;;  %v3003_v3 = vand.u32 4294901760, %v2441_v29 }
  0x6d   :  { %811 = vmatpush.msra.mxu2 %v638_v21  ;;  %854 = vmatpush.msra.mxu3 %v2186_v15 }
  0x6e   :  { %715 = vmatpush.msra.mxu0 %v2274_v34  ;;  %746 = vmatpush.msra.mxu1 %v2186_v15  ;;  %v913_v15 = vand.u32 4294901760, %v2404_v14  ;;  %v2436_v6 = vsub.f32 %v157_v27, %v2411_v61  ;;  %v95_v34 = vld [vmem:[#allocation2 + $0x10] sm:$0xff]  ;;  %v2997_v27 = vand.u32 4294901760, %v2514_v5 }
  0x6f   :  { %815 = vmatpush.msra.mxu2 %v644_v59  ;;  %856 = vmatpush.msra.mxu3 %v2198_v13  ;;  %v2449_v59 = vand.u32 4294901760, %v154_v32 }
  0x70   :  { %718 = vmatpush.msra.mxu0 %v2288_v53  ;;  %748 = vmatpush.msra.mxu1 %v2198_v13  ;;  %v919_v13 = vand.u32 4294901760, %v2414_v37  ;;  %v914_v21 = vsub.f32 %v2404_v14, %v913_v15 }
  0x71   :  { %819 = vmatpush.msra.mxu2 %v650_v30  ;;  %858 = vmatpush.msra.mxu3 %v2211_v16  ;;  %v100_v30 = vld [vmem:[#allocation5 + $0x10] sm:$0xff]  ;;  %v2476_v28 = vsub.f32 %v154_v32, %v2449_v59 }
  0x72   :  { %721 = vmatmul.f32.vlgmr.msra.gmra.mxu0 %v2311_v46  ;;  %750 = vmatpush.msra.mxu1 %v2211_v16  ;;  %v153_v16 = vld [vmem:[#allocation7 + $0x140] sm:$0xff]  ;;  %v920_v53 = vsub.f32 %v2414_v37, %v919_v13  ;;  %v105_v1 = vsub.f32 %v95_v34, %v100_v30  ;;  %v915_v45 = vand.u32 4294901760, %v914_v21  ;;  %v962_v21 = vsub.f32 %v2502_v11, %v2998_v31 }
  0x73   :  { %871 = vmatpush.msrb.mxu0 %v2387_v54  ;;  %823 = vmatpush.msra.mxu2 %v656_v40  ;;  %v2462_v19 = vand.u32 4294901760, %v153_v16  ;;  %v3006_v40 = vand.u32 4294901760, %v2436_v6  ;;  %v3000_v57 = vand.u32 4294901760, %v2476_v28  ;;  %v2995_v34 = vand.u32 4294901760, %v2528_v24 }
  0x74   :  { %860 = vmatpush.msra.mxu3 %v2234_v2  ;;  %752 = vmatpush.msra.mxu1 %v2234_v2  ;;  %v2455_v2 = vsub.f32 %v155_v18, %v2429_v44  ;;  %v110_v41 = vmul.f32 %v105_v1, %v105_v1  ;;  %v146_v18 = vld [vmem:[#allocation7 + $0x108] sm:$0xff]  ;;  %v963_v49 = vand.u32 4294901760, %v962_v21 }
  0x75   :  { %873 = vmatpush.msrb.mxu0 %v2394_v12  ;;  %827 = vmatpush.msra.mxu2 %v662_v38  ;;  %v926_v38 = vsub.f32 %v2425_v22, %v925_v8  ;;  %v932_v35 = vsub.f32 %v2436_v6, %v3006_v40  ;;  %v2489_v52 = vsub.f32 %v153_v16, %v2462_v19  ;;  %v168_v40 = vld [vmem:[#allocation7 + $0x1b8] sm:$0xff] }
  0x76   :  { %862 = vmatpush.msra.mxu3 %v2250_v47  ;;  %829 = vmatmul.f32.vlgmr.msra.gmra.mxu2 %v2293_v9  ;;  %v2518_v20 = vand.u32 4294901760, %v110_v41  ;;  %v950_v58 = vsub.f32 %v2476_v28, %v3000_v57 }
  0x77   :  { %875 = vmatpush.msrb.mxu0 %v2401_v60  ;;  %1014 = vmatpush.msrb.mxu2 %v2404_v14  ;;  %v927_v50 = vand.u32 4294901760, %v926_v38  ;;  %v933_v63 = vand.u32 4294901760, %v932_v35  ;;  %v2999_v23 = vand.u32 4294901760, %v2489_v52  ;;  %v2994_v38 = vand.u32 4294901760, %v2540_v42 }
  0x78   :  { %754 = vmatpush.msra.mxu1 %v2250_v47  ;;  %864 = vmatpush.msra.mxu3 %v2266_v10  ;;  %v3002_v47 = vand.u32 4294901760, %v2455_v2  ;;  %v2545_v32 = vsub.f32 %v110_v41, %v2518_v20  ;;  %v951_v16 = vand.u32 4294901760, %v950_v58  ;;  %v2570_v35 = vand.u32 4294901760, %v176_v17 }
  0x79   :  { %866 = vmatmul.f32.vlgmr.msra.gmra.mxu3 %v2293_v9  ;;  %877 = vmatpush.msrb.mxu0 %v2411_v61  ;;  %v921_v9 = vand.u32 4294901760, %v920_v53  ;;  %v956_v51 = vsub.f32 %v2489_v52, %v2999_v23  ;;  %v2557_v53 = vand.u32 4294901760, %v146_v18  ;;  %v974_v41 = vsub.f32 %v2528_v24, %v2995_v34  ;;  %v172_v34 = vld [vmem:[#allocation7 + $0x1d8] sm:$0xff] }
  0x7a   :  { %1017 = vmatpush.msrb.mxu2 %v2414_v37  ;;  %1067 = vmatpush.msrb.mxu3 %v2387_v54  ;;  %v944_v46 = vsub.f32 %v2455_v2, %v3002_v47  ;;  %v980_v56 = vsub.f32 %v2540_v42, %v2994_v38  ;;  %v3001_v58 = vand.u32 4294901760, %v2565_v4  ;;  %v2623_v23 = vand.u32 4294901760, %v172_v34 }
  0x7b   :  { %756 = vmatpush.msra.mxu1 %v2266_v10  ;;  %879 = vmatpush.msrb.mxu0 %v2418_v0  ;;  %v938_v10 = vsub.f32 %v2441_v29, %v3003_v3  ;;  %v957_v1 = vand.u32 4294901760, %v956_v51  ;;  %v173_v51 = vld [vmem:[#allocation7 + $0x1e0] sm:$0xff]  ;;  %v975_v21 = vand.u32 4294901760, %v974_v41 }
  0x7c   :  { %760 = vmatmul.f32.vlgmr.msra.gmra.mxu1 %v563_v48  ;;  %1020 = vmatpush.msrb.mxu2 %v2425_v22  ;;  %v148_v48 = vld [vmem:[#allocation7 + $0x118] sm:$0xff]  ;;  %v945_v7 = vand.u32 4294901760, %v944_v46  ;;  %v981_v41 = vand.u32 4294901760, %v980_v56 }
  0x7d   :  { %916 = vmatpush.msrb.mxu1 %v915_v45  ;;  %1069 = vmatpush.msrb.mxu3 %v2394_v12  ;;  %v939_v43 = vand.u32 4294901760, %v938_v10  ;;  %v2524_v33 = vand.u32 4294901760, %v148_v48  ;;  %v968_v45 = vsub.f32 %v2514_v5, %v2997_v27  ;;  %v175_v10 = vld [vmem:[#allocation7 + $0x1f0] sm:$0xff] }
  0x7e   :  { %881 = vmatpush.msrb.mxu0 %v2429_v44  ;;  %1023 = vmatpush.msrb.mxu2 %v2436_v6 }
  0x7f   :  { %922 = vmatpush.msrb.mxu1 %v921_v9  ;;  %1071 = vmatpush.msrb.mxu3 %v2401_v60  ;;  %v2553_v30 = vsub.f32 %v148_v48, %v2524_v33  ;;  %v3008_v9 = vand.u32 4294901760, %v2545_v32  ;;  %v2582_v48 = vsub.f32 %v146_v18, %v2557_v53 }
  0x80   :  { %883 = vmatpush.msrb.mxu0 %v2449_v59  ;;  %1026 = vmatpush.msrb.mxu2 %v2441_v29 }
  0x81   :  { %928 = vmatpush.msrb.mxu1 %v927_v50  ;;  %1073 = vmatpush.msrb.mxu3 %v2411_v61  ;;  %v2576_v50 = vand.u32 4294901760, %v145_v25  ;;  %v2996_v46 = vand.u32 4294901760, %v2553_v30  ;;  %v905_v18 = vsub.f32 %v2545_v32, %v3008_v9  ;;  %v167_v9 = vld [vmem:[#allocation7 + $0x1b0] sm:$0xff] }
  0x82   :  { %885 = vmatpush.msrb.mxu0 %v2462_v19  ;;  %1029 = vmatpush.msrb.mxu2 %v2455_v2 }
  0x83   :  { %934 = vmatpush.msrb.mxu1 %v933_v63  ;;  %1075 = vmatpush.msrb.mxu3 %v2418_v0  ;;  %3052 = vst [vmem:[#allocation15_spill] sm:$0xff] %v2576_v50  ;;  %v174_v63 = vld [vmem:[#allocation7 + $0x1e8] sm:$0xff]  ;;  %v906_v27 = vand.u32 4294901760, %v905_v18 }
  0x84   :  { %887 = vmatpush.msrb.mxu0 %v2473_v26  ;;  %1032 = vmatpush.msrb.mxu2 %v2476_v28  ;;  %v2606_v38 = vand.u32 4294901760, %v174_v63 }
  0x85   :  { %940 = vmatpush.msrb.mxu1 %v939_v43  ;;  %1077 = vmatpush.msrb.mxu3 %v2429_v44  ;;  %v969_v43 = vand.u32 4294901760, %v968_v45  ;;  %v2604_v45 = vsub.f32 %v145_v25, %v2576_v50  ;;  %v992_v25 = vsub.f32 %v2565_v4, %v3001_v58 }
  0x86   :  { %889 = vmatpush.msrb.mxu0 %v2486_v39  ;;  %1035 = vmatpush.msrb.mxu2 %v2489_v52  ;;  %v2628_v58 = vsub.f32 %v174_v63, %v2606_v38 }
  0x87   :  { %946 = vmatpush.msrb.mxu1 %v945_v7  ;;  %1079 = vmatpush.msrb.mxu3 %v2449_v59  ;;  %v2589_v7 = vand.u32 4294901760, %v175_v10  ;;  %v3007_v57 = vand.u32 4294901760, %v2604_v45 }
  0x88   :  { %891 = vmatpush.msrb.mxu0 %v2498_v55  ;;  %1038 = vmatpush.msrb.mxu2 %v2502_v11 }
  0x89   :  { %952 = vmatpush.msrb.mxu1 %v951_v16  ;;  %1081 = vmatpush.msrb.mxu3 %v2462_v19  ;;  %3053 = vst [vmem:[#allocation13_spill] sm:$0xff] %v2589_v7  ;;  %v2597_v16 = vsub.f32 %v176_v17, %v2570_v35  ;;  %v3004_v17 = vand.u32 4294901760, %v2582_v48 }
  0x8a   :  { %893 = vmatpush.msrb.mxu0 %v2510_v36  ;;  %1041 = vmatpush.msrb.mxu2 %v2514_v5 }
  0x8b   :  { %958 = vmatpush.msrb.mxu1 %v957_v1  ;;  %1083 = vmatpush.msrb.mxu3 %v2473_v26  ;;  %v986_v1 = vsub.f32 %v2553_v30, %v2996_v46  ;;  %v2618_v46 = vsub.f32 %v175_v10, %v2589_v7  ;;  %v3005_v31 = vand.u32 4294901760, %v2597_v16  ;;  %v998_v10 = vsub.f32 %v2582_v48, %v3004_v17 }
  0x8c   :  { %895 = vmatpush.msrb.mxu0 %v2524_v33  ;;  %1044 = vmatpush.msrb.mxu2 %v2528_v24  ;;  %v2647_v17 = vsub.f32 %v172_v34, %v2623_v23 }
  0x8d   :  { %964 = vmatpush.msrb.mxu1 %v963_v49  ;;  %1085 = vmatpush.msrb.mxu3 %v2486_v39  ;;  %v2611_v49 = vand.u32 4294901760, %v173_v51  ;;  %v987_v56 = vand.u32 4294901760, %v986_v1  ;;  %v993_v1 = vand.u32 4294901760, %v992_v25  ;;  %v3010_v47 = vand.u32 4294901760, %v2618_v46 }
  0x8e   :  { %897 = vmatpush.msrb.mxu0 %v2536_v62  ;;  %1047 = vmatpush.msrb.mxu2 %v2540_v42  ;;  %v1255_v3 = vsub.f32 %v2597_v16, %v3005_v31  ;;  %v999_v31 = vand.u32 4294901760, %v998_v10 }
  0x8f   :  { %970 = vmatpush.msrb.mxu1 %v969_v43  ;;  %1087 = vmatpush.msrb.mxu3 %v2498_v55  ;;  %v171_v43 = vld [vmem:[#allocation7 + $0x1d0] sm:$0xff]  ;;  %v2636_v18 = vsub.f32 %v173_v51, %v2611_v49  ;;  %v169_v51 = vld [vmem:[#allocation7 + $0x1c0] sm:$0xff]  ;;  %v1261_v14 = vsub.f32 %v2618_v46, %v3010_v47 }
  0x90   :  { %899 = vmatpush.msrb.mxu0 %v2557_v53  ;;  %1050 = vmatpush.msrb.mxu2 %v2553_v30  ;;  %v2640_v63 = vand.u32 4294901760, %v171_v43  ;;  %v1256_v10 = vand.u32 4294901760, %v1255_v3  ;;  %v3054_v3 = vand.u32 4294901760, %v2545_v32 }
  0x91   :  { %976 = vmatpush.msrb.mxu1 %v975_v21  ;;  %1089 = vmatpush.msrb.mxu3 %v2510_v36  ;;  %v170_v21 = vld [vmem:[#allocation7 + $0x1c8] sm:$0xff]  ;;  %v3012_v34 = vand.u32 4294901760, %v2636_v18 }
  0x92   :  { %901 = vmatpush.msrb.mxu0 %v2576_v50  ;;  %1053 = vmatpush.msrb.mxu2 %v2565_v4  ;;  %v2655_v25 = vand.u32 4294901760, %v170_v21 }
  0x93   :  { %982 = vmatpush.msrb.mxu1 %v981_v41  ;;  %1091 = vmatpush.msrb.mxu3 %v2524_v33  ;;  %v1004_v41 = vsub.f32 %v2604_v45, %v3007_v57  ;;  %v1273_v22 = vsub.f32 %v2636_v18, %v3012_v34  ;;  %v96_v57 = vld [vmem:[#allocation2 + $0x18] sm:$0xff]  ;;  %v3056_v34 = vand.u32 4294901760, %v2647_v17 }
  0x94   :  { %907 = vmatmul.f32.vlgmr.msrb.gmra.mxu0 %v906_v27  ;;  %1056 = vmatpush.msrb.mxu2 %v2582_v48  ;;  %v3009_v27 = vand.u32 4294901760, %v2628_v58 }
  0x95   :  { %1108 = vmatpush.msra.mxu0 %v913_v15  ;;  %988 = vmatpush.msrb.mxu1 %v987_v56  ;;  %v2666_v15 = vsub.f32 %v171_v43, %v2640_v63  ;;  %v2668_v56 = vand.u32 4294901760, %v169_v51  ;;  %v1005_v37 = vand.u32 4294901760, %v1004_v41  ;;  %v2680_v43 = vsub.f32 %v170_v21, %v2655_v25 }
  0x96   :  { %1093 = vmatpush.msrb.mxu3 %v2536_v62  ;;  %1059 = vmatpush.msrb.mxu2 %v2604_v45  ;;  %v3055_v41 = vand.u32 4294901760, %v2436_v6  ;;  %v3057_v6 = vand.u32 4294901760, %v2441_v29 }
  0x97   :  { %1112 = vmatpush.msra.mxu0 %v919_v13  ;;  %994 = vmatpush.msrb.mxu1 %v993_v1  ;;  %v1267_v13 = vsub.f32 %v2628_v58, %v3009_v27  ;;  %v2682_v1 = vand.u32 4294901760, %v168_v40  ;;  %v1262_v27 = vand.u32 4294901760, %v1261_v14  ;;  %v2694_v47 = vsub.f32 %v169_v51, %v2668_v56 }
  0x98   :  { %1095 = vmatpush.msrb.mxu3 %v2557_v53  ;;  %1062 = vmatmul.f32.vlgmr.msrb.gmra.mxu2 %v2545_v32  ;;  %v1279_v32 = vsub.f32 %v2647_v17, %v3056_v34  ;;  %v3058_v29 = vand.u32 4294901760, %v2666_v15  ;;  %v3059_v51 = vand.u32 4294901760, %v2455_v2  ;;  %v3061_v2 = vand.u32 4294901760, %v2476_v28 }
  0x99   :  { %1116 = vmatpush.msra.mxu0 %v925_v8  ;;  %1212 = vmatpush.msra.mxu2 %v2570_v35  ;;  %v166_v8 = vld [vmem:[#allocation7 + $0x1a8] sm:$0xff]  ;;  %v1268_v14 = vand.u32 4294901760, %v1267_v13  ;;  %v1296_v13 = vand.u32 4294901760, %v2694_v47  ;;  %v3062_v28 = vand.u32 4294901760, %v2489_v52  ;;  %v3063_v52 = vand.u32 4294901760, %v2502_v11 }
  0x9a   :  { %1000 = vmatpush.msrb.mxu1 %v999_v31  ;;  %1097 = vmatpush.msrb.mxu3 %v2576_v50  ;;  %v2696_v31 = vand.u32 4294901760, %v167_v9  ;;  %v101_v50 = vld [vmem:[#allocation5 + $0x18] sm:$0xff]  ;;  %v2708_v21 = vand.u32 4294901760, %v166_v8 }
  0x9b   :  { %1101 = vmatmul.f32.vlgmr.msrb.gmra.mxu3 %v3054_v3  ;;  %1120 = vmatpush.msra.mxu0 %v3055_v41  ;;  %v165_v3 = vld [vmem:[#allocation7 + $0x1a0] sm:$0xff]  ;;  %v2706_v41 = vsub.f32 %v168_v40, %v2682_v1  ;;  %v106_v34 = vsub.f32 %v96_v57, %v101_v50  ;;  %v1280_v57 = vand.u32 4294901760, %v1279_v32 }
  0x9c   :  { %1214 = vmatpush.msra.mxu2 %v2589_v7  ;;  %1257 = vmatpush.msra.mxu3 %v1256_v10  ;;  %v1274_v10 = vand.u32 4294901760, %v1273_v22  ;;  %v164_v7 = vld [vmem:[#allocation7 + $0x198] sm:$0xff]  ;;  %v2718_v40 = vsub.f32 %v167_v9, %v2696_v31  ;;  %v2731_v9 = vsub.f32 %v166_v8, %v2708_v21 }
  0x9d   :  { %1006 = vmatpush.msrb.mxu1 %v1005_v37  ;;  %1124 = vmatpush.msra.mxu0 %v3057_v6  ;;  %v1285_v37 = vsub.f32 %v2666_v15, %v3058_v29  ;;  %v2720_v6 = vand.u32 4294901760, %v165_v3  ;;  %v2733_v22 = vand.u32 4294901760, %v164_v7  ;;  %v163_v29 = vld [vmem:[#allocation7 + $0x190] sm:$0xff]  ;;  %v111_v32 = vmul.f32 %v106_v34, %v106_v34 }
  0x9e   :  { %1008 = vmatmul.f32.vlgmr.msrb.gmra.mxu1 %v2518_v20  ;;  %1216 = vmatpush.msra.mxu2 %v2606_v38  ;;  %v1308_v8 = vand.u32 4294901760, %v2718_v40  ;;  %v2749_v34 = vand.u32 4294901760, %v163_v29 }
  0x9f   :  { %1175 = vmatpush.msra.mxu1 %v2387_v54  ;;  %1263 = vmatpush.msra.mxu3 %v1262_v27  ;;  %v3060_v54 = vand.u32 4294901760, %v2680_v43  ;;  %v3015_v27 = vand.u32 4294901760, %v2706_v41 }
  0xa0   :  { %1128 = vmatpush.msra.mxu0 %v3059_v51  ;;  %1218 = vmatpush.msra.mxu2 %v2611_v49  ;;  %v2744_v51 = vsub.f32 %v165_v3, %v2720_v6  ;;  %v2757_v3 = vsub.f32 %v164_v7, %v2733_v22  ;;  %v2775_v11 = vsub.f32 %v163_v29, %v2749_v34 }
  0xa1   :  { %1177 = vmatpush.msra.mxu1 %v2394_v12  ;;  %1269 = vmatpush.msra.mxu3 %v1268_v14  ;;  %v1291_v50 = vsub.f32 %v2680_v43, %v3060_v54  ;;  %v1286_v12 = vand.u32 4294901760, %v1285_v37  ;;  %v1297_v14 = vsub.f32 %v2694_v47, %v1296_v13  ;;  %v162_v54 = vld [vmem:[#allocation7 + $0x188] sm:$0xff]  ;;  %v1314_v37 = vand.u32 4294901760, %v2731_v9 }
  0xa2   :  { %1132 = vmatpush.msra.mxu0 %v3061_v2  ;;  %1220 = vmatpush.msra.mxu2 %v2623_v23  ;;  %v161_v2 = vld [vmem:[#allocation7 + $0x180] sm:$0xff]  ;;  %v1320_v7 = vand.u32 4294901760, %v2744_v51 }
  0xa3   :  { %1179 = vmatpush.msra.mxu1 %v2401_v60  ;;  %1275 = vmatpush.msra.mxu3 %v1274_v10  ;;  %v1292_v60 = vand.u32 4294901760, %v1291_v50  ;;  %v1303_v10 = vsub.f32 %v2706_v41, %v3015_v27  ;;  %v1309_v50 = vsub.f32 %v2718_v40, %v1308_v8  ;;  %v3064_v27 = vand.u32 4294901760, %v2514_v5 }
  0xa4   :  { %1136 = vmatpush.msra.mxu0 %v3062_v28  ;;  %1222 = vmatpush.msra.mxu2 %v2640_v63  ;;  %v2762_v28 = vand.u32 4294901760, %v162_v54  ;;  %v3065_v5 = vand.u32 4294901760, %v2528_v24  ;;  %v1332_v24 = vand.u32 4294901760, %v2775_v11 }
  0xa5   :  { %1181 = vmatpush.msra.mxu1 %v2411_v61  ;;  %1281 = vmatpush.msra.mxu3 %v1280_v57  ;;  %v2764_v61 = vand.u32 4294901760, %v111_v32  ;;  %v1298_v57 = vand.u32 4294901760, %v1297_v14  ;;  %v1326_v14 = vand.u32 4294901760, %v2757_v3 }
  0xa6   :  { %1140 = vmatpush.msra.mxu0 %v3063_v52  ;;  %1224 = vmatpush.msra.mxu2 %v2655_v25  ;;  %v2777_v52 = vand.u32 4294901760, %v161_v2 }
  0xa7   :  { %1183 = vmatpush.msra.mxu1 %v2418_v0  ;;  %1287 = vmatpush.msra.mxu3 %v1286_v12  ;;  %v1304_v0 = vand.u32 4294901760, %v1303_v10  ;;  %v1315_v12 = vsub.f32 %v2731_v9, %v1314_v37  ;;  %v2791_v29 = vsub.f32 %v111_v32, %v2764_v61  ;;  %v3066_v10 = vand.u32 4294901760, %v2540_v42 }
  0xa8   :  { %1144 = vmatpush.msra.mxu0 %v3064_v27  ;;  %1226 = vmatpush.msra.mxu2 %v2668_v56  ;;  %v2788_v27 = vsub.f32 %v162_v54, %v2762_v28  ;;  %v2802_v54 = vsub.f32 %v161_v2, %v2777_v52  ;;  %v1327_v32 = vsub.f32 %v2757_v3, %v1326_v14 }
  0xa9   :  { %1185 = vmatpush.msra.mxu1 %v2429_v44  ;;  %1293 = vmatpush.msra.mxu3 %v1292_v60  ;;  %v1310_v44 = vand.u32 4294901760, %v1309_v50  ;;  %v1321_v60 = vsub.f32 %v2744_v51, %v1320_v7  ;;  %v1245_v50 = vand.u32 4294901760, %v2791_v29 }
  0xaa   :  { %1148 = vmatpush.msra.mxu0 %v3065_v5  ;;  %1228 = vmatpush.msra.mxu2 %v2682_v1  ;;  %v1338_v42 = vand.u32 4294901760, %v2788_v27  ;;  %v3069_v5 = vand.u32 4294901760, %v2582_v48 }
  0xab   :  { %1187 = vmatpush.msra.mxu1 %v2449_v59  ;;  %1299 = vmatpush.msra.mxu3 %v1298_v57  ;;  %v1316_v59 = vand.u32 4294901760, %v1315_v12  ;;  %v3067_v57 = vand.u32 4294901760, %v2553_v30  ;;  %v1322_v2 = vand.u32 4294901760, %v1321_v60  ;;  %v1333_v30 = vsub.f32 %v2775_v11, %v1332_v24 }
  0xac   :  { %1152 = vmatpush.msra.mxu0 %v3066_v10  ;;  %1230 = vmatpush.msra.mxu2 %v2696_v31  ;;  %v1328_v12 = vand.u32 4294901760, %v1327_v32  ;;  %v97_v10 = vld [vmem:[#allocation2 + $0x20] sm:$0xff] }
  0xad   :  { %1189 = vmatpush.msra.mxu1 %v2462_v19  ;;  %1305 = vmatpush.msra.mxu3 %v1304_v0  ;;  %v3068_v19 = vand.u32 4294901760, %v2565_v4  ;;  %v1344_v0 = vand.u32 4294901760, %v2802_v54  ;;  %v1246_v4 = vsub.f32 %v2791_v29, %v1245_v50  ;;  %v1334_v48 = vand.u32 4294901760, %v1333_v30 }
  0xae   :  { %1156 = vmatpush.msra.mxu0 %v3067_v57  ;;  %1232 = vmatpush.msra.mxu2 %v2708_v21 }
  0xaf   :  { %1191 = vmatpush.msra.mxu1 %v2473_v26  ;;  %1311 = vmatpush.msra.mxu3 %v1310_v44  ;;  %v1339_v26 = vsub.f32 %v2788_v27, %v1338_v42  ;;  %v1345_v44 = vsub.f32 %v2802_v54, %v1344_v0 }
  0xb0   :  { %1160 = vmatpush.msra.mxu0 %v3068_v19  ;;  %1234 = vmatpush.msra.mxu2 %v2720_v6 }
  0xb1   :  { %1193 = vmatpush.msra.mxu1 %v2486_v39  ;;  %1317 = vmatpush.msra.mxu3 %v1316_v59  ;;  %v3070_v39 = vand.u32 4294901760, %v2604_v45  ;;  %v1340_v60 = vand.u32 4294901760, %v1339_v26  ;;  %v1346_v45 = vand.u32 4294901760, %v1345_v44  ;;  %v102_v59 = vld [vmem:[#allocation5 + $0x20] sm:$0xff] }
  0xb2   :  { %1164 = vmatpush.msra.mxu0 %v3069_v5  ;;  %1236 = vmatpush.msra.mxu2 %v2733_v22  ;;  %v107_v32 = vsub.f32 %v97_v10, %v102_v59 }
  0xb3   :  { %1195 = vmatpush.msra.mxu1 %v2498_v55  ;;  %1323 = vmatpush.msra.mxu3 %v1322_v2  ;;  %v1247_v55 = vand.u32 4294901760, %v1246_v4 }
  0xb4   :  { %1168 = vmatpush.msra.mxu0 %v3070_v39  ;;  %1238 = vmatpush.msra.mxu2 %v2749_v34 }
  0xb5   :  { %1197 = vmatpush.msra.mxu1 %v2510_v36  ;;  %1329 = vmatpush.msra.mxu3 %v1328_v12  ;;  %v3071_v36 = vand.u32 4294901760, %v2597_v16 }
  0xb6   :  { %1170 = vmatmul.f32.vlgmr.msra.gmra.mxu0 %v2518_v20  ;;  %1240 = vmatpush.msra.mxu2 %v2762_v28 }
  0xb7   :  { %1355 = vmatpush.msrb.mxu0 %v2597_v16  ;;  %1199 = vmatpush.msra.mxu1 %v2524_v33  ;;  %v3072_v33 = vand.u32 4294901760, %v2618_v46  ;;  %v3075_v16 = vld [vmem:[#allocation13_spill] sm:$0xff] }
  0xb8   :  { %1335 = vmatpush.msra.mxu3 %v1334_v48  ;;  %1242 = vmatpush.msra.mxu2 %v2777_v52 }
  0xb9   :  { %1358 = vmatpush.msrb.mxu0 %v2618_v46  ;;  %1201 = vmatpush.msra.mxu1 %v2536_v62  ;;  %v3073_v62 = vld [vmem:[#allocation15_spill] sm:$0xff]  ;;  %v3076_v46 = vand.u32 4294901760, %v2636_v18 }
  0xba   :  { %1341 = vmatpush.msra.mxu3 %v1340_v60  ;;  %1248 = vmatmul.f32.vlgmr.msra.gmra.mxu2 %v1247_v55 }
  0xbb   :  { %1361 = vmatpush.msrb.mxu0 %v2628_v58  ;;  %1449 = vmatpush.msrb.mxu2 %v3071_v36 }
  0xbc   :  { %1203 = vmatpush.msra.mxu1 %v2557_v53  ;;  %1347 = vmatpush.msra.mxu3 %v1346_v45  ;;  %v3074_v53 = vand.u32 4294901760, %v2628_v58  ;;  %v112_v58 = vmul.f32 %v107_v32, %v107_v32 }
  0xbd   :  { %1349 = vmatmul.f32.vlgmr.msra.gmra.mxu3 %v2764_v61  ;;  %1364 = vmatpush.msrb.mxu0 %v2636_v18  ;;  %v179_v18 = vld [vmem:[#allocation7 + $0x210] sm:$0x7f] }
  0xbe   :  { %1453 = vmatpush.msrb.mxu2 %v3072_v33  ;;  %1516 = vmatpush.msrb.mxu3 %v2570_v35 }
  0xbf   :  { %1205 = vmatpush.msra.mxu1 %v3073_v62  ;;  %1367 = vmatpush.msrb.mxu0 %v2647_v17 }
  0xc0   :  { %1207 = vmatmul.f32.vlgmr.msra.gmra.mxu1 %v2518_v20  ;;  %1457 = vmatpush.msrb.mxu2 %v3074_v53  ;;  %v3077_v20 = vand.u32 4294901760, %v2647_v17  ;;  %v3079_v17 = vand.u32 4294901760, %v2680_v43 }
  0xc1   :  { %1408 = vmatpush.msrb.mxu1 %v2570_v35  ;;  %1518 = vmatpush.msrb.mxu3 %v3075_v16  ;;  %v3078_v35 = vand.u32 4294901760, %v2666_v15 }
  0xc2   :  { %1370 = vmatpush.msrb.mxu0 %v2666_v15  ;;  %1461 = vmatpush.msrb.mxu2 %v3076_v46  ;;  %v3080_v15 = vand.u32 4294901760, %v2706_v41 }
  0xc3   :  { %1410 = vmatpush.msrb.mxu1 %v3075_v16  ;;  %1520 = vmatpush.msrb.mxu3 %v2606_v38 }
  0xc4   :  { %1373 = vmatpush.msrb.mxu0 %v2680_v43  ;;  %1465 = vmatpush.msrb.mxu2 %v3077_v20 }
  0xc5   :  { %1412 = vmatpush.msrb.mxu1 %v2606_v38  ;;  %1522 = vmatpush.msrb.mxu3 %v2611_v49  ;;  %v182_v38 = vsel %vm180_vm0, %v112_v58, 0 }
  0xc6   :  { %1376 = vmatpush.msrb.mxu0 %v2694_v47  ;;  %1469 = vmatpush.msrb.mxu2 %v3078_v35  ;;  %v2892_v43 = vand.u32 4294901760, %v182_v38 }
  0xc7   :  { %1414 = vmatpush.msrb.mxu1 %v2611_v49  ;;  %1524 = vmatpush.msrb.mxu3 %v2623_v23  ;;  %v186_v49 = vsel %vm184_vm1, %v179_v18, 0 }
  0xc8   :  { %1379 = vmatpush.msrb.mxu0 %v2706_v41  ;;  %1473 = vmatpush.msrb.mxu2 %v3079_v17  ;;  %v2897_v47 = vand.u32 4294901760, %v186_v49  ;;  %v1572_v41 = vsub.f32 %v182_v38, %v2892_v43  ;;  %v1881_v38 = vmov 0.0  }
  0xc9   :  { %1416 = vmatpush.msrb.mxu1 %v2623_v23  ;;  %1526 = vmatpush.msrb.mxu3 %v2640_v63  ;;  %v178_v23 = vld [vmem:[#allocation7 + $0x208] sm:$0xff]  ;;  %92 = vst [vmem:[#allocation8] sm:$0x1] %v1881_v38 }
  0xca   :  { %1382 = vmatpush.msrb.mxu0 %v2718_v40  ;;  %1477 = vmatpush.msrb.mxu2 %v1296_v13  ;;  %v1573_v40 = vand.u32 4294901760, %v1572_v41 }
  0xcb   :  { %1418 = vmatpush.msrb.mxu1 %v2640_v63  ;;  %1528 = vmatpush.msrb.mxu3 %v2655_v25  ;;  %v177_v63 = vld [vmem:[#allocation7 + $0x200] sm:$0xff] }
  0xcc   :  { %1385 = vmatpush.msrb.mxu0 %v2731_v9  ;;  %1481 = vmatpush.msrb.mxu2 %v3080_v15  ;;  %v2913_v13 = vand.u32 4294901760, %v177_v63 }
  0xcd   :  { %1420 = vmatpush.msrb.mxu1 %v2655_v25  ;;  %1530 = vmatpush.msrb.mxu3 %v2668_v56  ;;  %v2904_v25 = vand.u32 4294901760, %v178_v23 }
  0xce   :  { %1388 = vmatpush.msrb.mxu0 %v2744_v51  ;;  %1485 = vmatpush.msrb.mxu2 %v1308_v8  ;;  %v1606_v9 = vsub.f32 %v177_v63, %v2913_v13  ;;  %v1574_v8 = vsub.f32 %v1572_v41, %v1573_v40 }
  0xcf   :  { %1422 = vmatpush.msrb.mxu1 %v2668_v56  ;;  %1532 = vmatpush.msrb.mxu3 %v2682_v1  ;;  %v1594_v56 = vsub.f32 %v186_v49, %v2897_v47 }
  0xd0   :  { %1391 = vmatpush.msrb.mxu0 %v2757_v3  ;;  %1489 = vmatpush.msrb.mxu2 %v1314_v37 }
  0xd1   :  { %1424 = vmatpush.msrb.mxu1 %v2682_v1  ;;  %1534 = vmatpush.msrb.mxu3 %v2696_v31  ;;  %v1600_v1 = vsub.f32 %v178_v23, %v2904_v25 }
  0xd2   :  { %1394 = vmatpush.msrb.mxu0 %v2775_v11  ;;  %1493 = vmatpush.msrb.mxu2 %v1320_v7  ;;  %v1880_v11 = vmov 0  }
  0xd3   :  { %1426 = vmatpush.msrb.mxu1 %v2696_v31  ;;  %1536 = vmatpush.msrb.mxu3 %v2708_v21  ;;  %v1595_v31 = vand.u32 4294901760, %v1594_v56 }
  0xd4   :  { %1397 = vmatpush.msrb.mxu0 %v2788_v27  ;;  %1497 = vmatpush.msrb.mxu2 %v1326_v14  ;;  %v226_v14 = vpop.f32.mrf.mxu0 }
  0xd5   :  { %1428 = vmatpush.msrb.mxu1 %v2708_v21  ;;  %1538 = vmatpush.msrb.mxu3 %v2720_v6  ;;  %v1601_v21 = vand.u32 4294901760, %v1600_v1  ;;  %v1596_v51 = vsub.f32 %v1594_v56, %v1595_v31 }
  0xd6   :  { %1400 = vmatpush.msrb.mxu0 %v2802_v54  ;;  %1501 = vmatpush.msrb.mxu2 %v1332_v24  ;;  %v420_v54 = vpop.f32.mrf.mxu3 }
  0xd7   :  { %1430 = vmatpush.msrb.mxu1 %v2720_v6  ;;  %1540 = vmatpush.msrb.mxu3 %v2733_v22  ;;  %v1607_v6 = vand.u32 4294901760, %v1606_v9  ;;  %v1602_v37 = vsub.f32 %v1600_v1, %v1601_v21  ;;  %v1597_v3 = vand.u32 4294901760, %v1596_v51 }
  0xd8   :  { %1403 = vmatmul.f32.vlgmr.msrb.gmra.mxu0 %v2791_v29  ;;  %1505 = vmatpush.msrb.mxu2 %v1338_v42  ;;  %v381_v29 = vpop.f32.mrf.mxu2 }
  0xd9   :  { %1432 = vmatpush.msrb.mxu1 %v2733_v22  ;;  %1542 = vmatpush.msrb.mxu3 %v2749_v34  ;;  %v1575_v22 = vand.u32 4294901760, %v1574_v8  ;;  %v1608_v7 = vsub.f32 %v1606_v9, %v1607_v6 }
  0xda   :  { %1509 = vmatpush.msrb.mxu2 %v1344_v0  ;;  %1566 = vmatpush.msra.mxu0 %v2897_v47 }
  0xdb   :  { %1434 = vmatpush.msrb.mxu1 %v2749_v34  ;;  %1544 = vmatpush.msrb.mxu3 %v2762_v28  ;;  %v1603_v34 = vand.u32 4294901760, %v1602_v37 }
  0xdc   :  { %1511 = vmatmul.f32.vlgmr.msrb.gmra.mxu2 %v2764_v61  ;;  %1568 = vmatpush.msra.mxu0 %v2904_v25  ;;  %v489_v42 = vpop.f32.mrf.mxu0 }
  0xdd   :  { %1631 = vmatpush.msra.mxu2 %v1594_v56  ;;  %1436 = vmatpush.msrb.mxu1 %v2762_v28  ;;  %v1609_v28 = vand.u32 4294901760, %v1608_v7 }
  0xde   :  { %1546 = vmatpush.msrb.mxu3 %v2777_v52  ;;  %1570 = vmatpush.msra.mxu0 %v2913_v13 }
  0xdf   :  { %1548 = vmatmul.f32.vlgmr.msrb.gmra.mxu3 %v2764_v61  ;;  %1438 = vmatpush.msrb.mxu1 %v2777_v52  ;;  %v1725_v61 = vld [vmem:[%s2965_s2] sm:$0xff]  ;;  %v327_v52 = vpop.f32.mrf.mxu1  ;;  %s1882_s2 = smov [#allocation8]  }
  0xe0   :  { %1658 = vmatpush.msra.mxu3 %v2897_v47  ;;  %1634 = vmatpush.msra.mxu2 %v1600_v1  ;;  %v328_v27 = vadd.f32 %v327_v52, %v226_v14  ;;  %v567_v30 = vpop.f32.mrf.mxu2  ;;  %v668_v12 = vpop.f32.mrf.mxu3  ;;  %s1745_s5 = sshll.u32 %s1882_s2, 4  ;;  %s1746_s5 = int_to_ptr.vmem [resolvable:$true] %s1745_s5 }
  0xe1   :  { %1442 = vmatmul.f32.vlgmr.msrb.gmra.mxu1 %v1245_v50  ;;  %1576 = vmatmul.f32.vlgmr.msra.gmra.mxu0 %v1575_v22 }
  0xe2   :  { %1598 = vmatpush.msra.mxu1 %v1597_v3  ;;  %1660 = vmatpush.msra.mxu3 %v2904_v25  ;;  %v382_v24 = vadd.f32 %v381_v29, %v328_v27  ;;  %v1724_v29 = vld [vmem:[#allocation8] sm:$0x1] }
  0xe3   :  { %1637 = vmatpush.msra.mxu2 %v1606_v9  ;;  %1686 = vmatpush.msrb.mxu0 %v1595_v31 }
  0xe4   :  { %1604 = vmatpush.msra.mxu1 %v1603_v34  ;;  %1640 = vmatmul.f32.vlgmr.msra.gmra.mxu2 %v1572_v41  ;;  %v421_v57 = vadd.f32 %v420_v54, %v382_v24 }
  0xe5   :  { %1662 = vmatpush.msra.mxu3 %v2913_v13  ;;  %1690 = vmatpush.msrb.mxu0 %v1601_v21 }
  0xe6   :  { %1610 = vmatpush.msra.mxu1 %v1609_v28  ;;  %1772 = vset.pattern.permute.xlu0 %v1880_v11  ;;  %v490_v50 = vadd.f32 %v489_v42, %v421_v57 }
  0xe7   :  { %1666 = vmatmul.f32.vlgmr.msra.gmra.mxu3 %v1573_v40  ;;  %1694 = vmatpush.msrb.mxu0 %v1607_v6  ;;  %v526_v2 = vpop.f32.mrf.mxu1 }
  0xe8   :  { %1714 = vmatpush.msrb.mxu1 %v2897_v47  ;;  %1728 = vperm.xlu0 %1772, %v1725_v61   ;;  %v527_v19 = vadd.f32 %v526_v2, %v490_v50 }
  0xe9   :  { %1612 = vmatmul.f32.vlgmr.msra.gmra.mxu1 %v2892_v43  ;;  %1696 = vmatmul.f32.vlgmr.msrb.gmra.mxu0 %v2892_v43 }
  0xea   :  { %1716 = vmatpush.msrb.mxu1 %v2904_v25  ;;  %v568_v0 = vadd.f32 %v567_v30, %v527_v19 }
  0xec   :  { %1718 = vmatpush.msrb.mxu1 %v2913_v13  ;;  %v669_v26 = vadd.f32 %v668_v12, %v568_v0 }
  0xef   :  { %v722_v5 = vpop.f32.mrf.mxu0 }
  0xf0   :  { %v723_v39 = vadd.f32 %v722_v5, %v669_v26 }
  0xf1   :  { %1720 = vmatmul.f32.vlgmr.msrb.gmra.mxu1 %v2892_v43 }
  0xf9   :  { %v761_v4 = vpop.f32.mrf.mxu1  ;;  %v830_v44 = vpop.f32.mrf.mxu2 }
  0xfa   :  { %v762_v48 = vadd.f32 %v761_v4, %v723_v39 }
  0xfc   :  { %v831_v60 = vadd.f32 %v830_v44, %v762_v48  ;;  %v867_v55 = vpop.f32.mrf.mxu3 }
  0xfe   :  { %v868_v36 = vadd.f32 %v867_v55, %v831_v60 }
 0x111   :  { %v908_v45 = vpop.f32.mrf.mxu0 }
 0x112   :  { %v909_v62 = vadd.f32 %v908_v45, %v868_v36 }
 0x11b   :  { %v1009_v33 = vpop.f32.mrf.mxu1  ;;  %v1063_v59 = vpop.f32.mrf.mxu2 }
 0x11c   :  { %v1010_v10 = vadd.f32 %v1009_v33, %v909_v62 }
 0x11e   :  { %v1064_v53 = vadd.f32 %v1063_v59, %v1010_v10  ;;  %v1102_v16 = vpop.f32.mrf.mxu3 }
 0x120   :  { %v1103_v32 = vadd.f32 %v1102_v16, %v1064_v53 }
 0x133   :  { %v1171_v46 = vpop.f32.mrf.mxu0 }
 0x134   :  { %v1172_v35 = vadd.f32 %v1171_v46, %v1103_v32 }
 0x13d   :  { %v1208_v20 = vpop.f32.mrf.mxu1  ;;  %v1249_v17 = vpop.f32.mrf.mxu2 }
 0x13e   :  { %v1209_v58 = vadd.f32 %v1208_v20, %v1172_v35 }
 0x140   :  { %v1250_v18 = vadd.f32 %v1249_v17, %v1209_v58  ;;  %v1350_v49 = vpop.f32.mrf.mxu3 }
 0x142   :  { %v1351_v23 = vadd.f32 %v1350_v49, %v1250_v18 }
 0x155   :  { %v1404_v15 = vpop.f32.mrf.mxu0 }
 0x156   :  { %v1405_v43 = vadd.f32 %v1404_v15, %v1351_v23 }
 0x15a   :  { %v1729_v7 = vpop.permute.xlu0 %1728 }
 0x15e   :  { %v1443_v47 = vpop.f32.mrf.mxu1  ;;  %v1577_v41 = vpop.f32.mrf.mxu0 }
 0x15f   :  { %v1444_v63 = vadd.f32 %v1443_v47, %v1405_v43  ;;  %v1512_v25 = vpop.f32.mrf.mxu2 }
 0x161   :  { %v1513_v56 = vadd.f32 %v1512_v25, %v1444_v63 }
 0x162   :  { %v1549_v13 = vpop.f32.mrf.mxu3 }
 0x163   :  { %v1550_v1 = vadd.f32 %v1549_v13, %v1513_v56 }
 0x165   :  { %v1578_v40 = vadd.f32 %v1577_v41, %v1550_v1 }
 0x166   :  { %v1613_v31 = vpop.f32.mrf.mxu1  ;;  %v1697_v6 = vpop.f32.mrf.mxu0 }
 0x167   :  { %v1614_v9 = vadd.f32 %v1613_v31, %v1578_v40  ;;  %v1641_v21 = vpop.f32.mrf.mxu2 }
 0x169   :  { %v1642_v8 = vadd.f32 %v1641_v21, %v1614_v9 }
 0x16a   :  { %v1667_v51 = vpop.f32.mrf.mxu3 }
 0x16b   :  { %v1668_v37 = vadd.f32 %v1667_v51, %v1642_v8 }
 0x16d   :  { %v1698_v22 = vadd.f32 %v1697_v6, %v1668_v37 }
 0x16e   :  { %v1721_v3 = vpop.f32.mrf.mxu1 }
 0x16f   :  { %v1722_v34 = vadd.f32 %v1721_v3, %v1698_v22 }
 0x171   :  { %v1731_v28 = vmul.f32 %v1729_v7, %v1722_v34 }
 0x173   :  { %v1732_v61 = vrot.slane %v1731_v28, 4 }
 0x175   :  { %v1733_v11 = vadd.f32 %v1732_v61, %v1731_v28 }
 0x177   :  { %v1734_v52 = vrot.slane %v1733_v11, 2 }
 0x179   :  { %v1735_v14 = vadd.f32 %v1734_v52, %v1733_v11 }
 0x17b   :  { %v1736_v27 = vrot.slane %v1735_v14, 1 }
 0x17d   :  { %v1737_v24 = vadd.f32 %v1736_v27, %v1735_v14 }
 0x17f   :  { %v1738_v54 = vadd.f32 %v1737_v24, %v1724_v29 }
 0x181   :  { %1739 = vst [vmem:[#allocation8] sm:$0x1] %v1738_v54 }
 0x182   :  { %1750 = dma.vmem_to_hbm [thread:$0]  %s1746_s5, 16, %s1748_s8, [#allocation4]  }
 0x183   :  { %1873 = dma.done.wait [#allocation4], 16  }
 0x184   :  { %1874 = vsyncadd [#allocation4], 4294967280 }
 0x185   :  { %1755 = vsyncpa [#allocation3], 1 }
 0x186   :  { %1756 = vsyncpa [#allocation6], 1 }
 0x187   :  { %1757 = vsyncpa [#allocation4], 1 }

</bundles_post_ra>
